<compile_context>
chip_gen: v6e
topology: v6e:2x2x1
jax: 0.10.0
libtpu: 0.0.40
codegen_flags: <defaults>
</compile_context>

<pallas_src>
import functools

import jax
import jax.numpy as jnp
from jax import lax
from jax.experimental import pallas as pl
from jax.experimental.pallas import tpu as pltpu

LANE = 128     # lane-dense padding for all feature / hidden dims
SUBLANE = 8    # sublane alignment for node counts


def _round_up(x, m):
    return ((x + m - 1) // m) * m


# --------------------------------------------------------------------------- #
# Fused Pallas kernel (one grid step == one graph; weights resident in VMEM)
# --------------------------------------------------------------------------- #
def _fused_forward_kernel(vals_ref, cons_ref, adj_ref, adjt_ref, w_ref, b_ref,
                          obj_ref, node_ref, *, struct, n_vals, n_cons,
                          nvp, ncp):
    """Entire InfoGraphPretrainGNN forward for one graph, all operands in VMEM.

    struct: static dict of (weight_idx, bias_idx) tuples into the stacked
    (bf16) weight / (f32) bias tensors.  n_vals / n_cons are unpadded counts,
    nvp / ncp the padded ones.
    """

    def mm(x, wi):
        # bf16 x bf16 MXU matmul with f32 accumulation.
        return jnp.dot(x.astype(jnp.bfloat16), w_ref[wi],
                       preferred_element_type=jnp.float32)

    def mlp(x, ids, final_relu=False):
        n = len(ids)
        for j, (wi, bi) in enumerate(ids):
            x = mm(x, wi) + b_ref[bi]
            if j < n - 1 or final_relu:
                x = jnp.maximum(x, 0.0)
        return x

    # ---- node encoders ----
    h_v = mlp(vals_ref[...], struct["enc_vals"], final_relu=True)   # (NVp,128) f32
    h_c = mlp(cons_ref[...], struct["enc_cons"], final_relu=True)   # (NCp,128) f32

    adj = adj_ref[...].astype(jnp.bfloat16)     # (NCp, NVp)  0/1, exact in bf16
    adjt = adjt_ref[...].astype(jnp.bfloat16)   # (NVp, NCp)  hoisted transpose

    # ---- bipartite message passing (simultaneous update from pre-update state)
    # TODO(synk): for deep num_conv_layers switch to lax.fori_loop with
    # contiguous dynamic w_ref/b_ref indices to bound live ranges.
    for (cwm, cws, cb, vwm, vws, vb) in struct["convs"]:
        hv_b = h_v.astype(jnp.bfloat16)
        hc_b = h_c.astype(jnp.bfloat16)

        # cons <- vals
        agg_c = jnp.dot(adj, hv_b, preferred_element_type=jnp.float32)
        h_c_new = jnp.maximum(
            mm(agg_c, cwm)
            + jnp.dot(hc_b, w_ref[cws], preferred_element_type=jnp.float32)
            + b_ref[cb], 0.0)

        # vals <- cons (pre-transposed adjacency, plain jnp.dot)
        agg_v = jnp.dot(adjt, hc_b, preferred_element_type=jnp.float32)
        h_v_new = jnp.maximum(
            mm(agg_v, vwm)
            + jnp.dot(hv_b, w_ref[vws], preferred_element_type=jnp.float32)
            + b_ref[vb], 0.0)

        h_v, h_c = h_v_new, h_c_new

    # ---- merged node block [h_v ; h_c] ----
    h_all = jnp.concatenate([h_v, h_c], axis=0)              # (NVp+NCp, 128)
    nt, hp = h_all.shape

    # ---- masked mean pool over the valid rows of both partitions ----
    row = lax.broadcasted_iota(jnp.int32, (nt, hp), 0)
    valid = (row < n_vals) | ((row >= nvp) & (row < nvp + n_cons))
    pooled = jnp.sum(jnp.where(valid, h_all, 0.0), axis=0, keepdims=True)
    pooled = pooled * (1.0 / float(n_vals + n_cons))          # (1, 128)

    # ---- graph branch: backbone readout MLP -> predictor ----
    obj = mlp(mlp(pooled, struct["readout"]), struct["predictor"])
    obj_ref[...] = obj.astype(obj_ref.dtype)                  # (1, 128)

    # ---- node branch: fc_nodes -> node_predictor, ONCE on the merged block ----
    node_out = mlp(mlp(h_all, struct["fc_nodes"]), struct["node_predictor"])
    node_ref[...] = node_out.astype(node_ref.dtype)           # (NVp+NCp, 128)


def infograph_forward(weights, biases, struct, hid_dim, vals_x, cons_x, adj):
    """Batched forward.  vals_x:(G,nv,fv) cons_x:(G,nc,fc) adj:(G,nc,nv)."""
    G, n_vals, v_feat = vals_x.shape
    _, n_cons, c_feat = cons_x.shape
    nvp = _round_up(n_vals, SUBLANE)
    ncp = _round_up(n_cons, SUBLANE)
    nt = nvp + ncp
    lane = weights.shape[-1]

    vals_p = jnp.pad(vals_x, ((0, 0), (0, nvp - n_vals), (0, lane - v_feat)))
    cons_p = jnp.pad(cons_x, ((0, 0), (0, ncp - n_cons), (0, lane - c_feat)))
    adj_p = jnp.pad(adj, ((0, 0), (0, ncp - n_cons), (0, nvp - n_vals)))
    adjt_p = jnp.transpose(adj_p, (0, 2, 1))     # transpose hoisted out of kernel

    kernel = functools.partial(_fused_forward_kernel, struct=struct,
                               n_vals=n_vals, n_cons=n_cons, nvp=nvp, ncp=ncp)

    def per_graph(shape):
        return pl.BlockSpec((None,) + shape, lambda g: (g, 0, 0))

    # Constant block index -> weight/bias stacks DMA'd once, resident in VMEM.
    resident_w = pl.BlockSpec(weights.shape, lambda g: (0, 0, 0))
    resident_b = pl.BlockSpec(biases.shape, lambda g: (0, 0, 0))

    obj_out, node_out = pl.pallas_call(
        kernel,
        grid=(G,),
        out_shape=(jax.ShapeDtypeStruct((G, 1, lane), jnp.float32),
                   jax.ShapeDtypeStruct((G, nt, lane), jnp.float32)),
        in_specs=[per_graph((nvp, lane)), per_graph((ncp, lane)),
                  per_graph((ncp, nvp)), per_graph((nvp, ncp)),
                  resident_w, resident_b],
        out_specs=(per_graph((1, lane)), per_graph((nt, lane))),
        compiler_params=pltpu.CompilerParams(
            dimension_semantics=("parallel",)),
    )(vals_p, cons_p, adj_p, adjt_p, weights, biases)

    # strip padding back to logical shapes (tiny, outside the kernel)
    obj_emb = obj_out[:, 0, :hid_dim]                                  # (G, H)
    node_emb = jnp.concatenate(
        [node_out[:, :n_vals, :hid_dim], node_out[:, nvp:nvp + n_cons, :hid_dim]],
        axis=1)                                                        # (G, nv+nc, H)
    return obj_emb, node_emb


# --------------------------------------------------------------------------- #
# Parameter construction (deterministic, in-script, unpadded "logical" params)
# --------------------------------------------------------------------------- #
def make_mlp_params(key, dims):
    params = []
    for i in range(len(dims) - 1):
        key, kw, kb = jax.random.split(key, 3)
        fan_in = dims[i]
        w = jax.random.normal(kw, (dims[i], dims[i + 1]), jnp.float32) / jnp.sqrt(
            jnp.float32(fan_in))
        b = 0.01 * jax.random.normal(kb, (1, dims[i + 1]), jnp.float32)
        params.append((w, b))
    return params


def make_infograph_params(key, vals_feat, cons_feat, hid_dim, num_encode_layers,
                          num_conv_layers, num_pred_layers, num_mlp_layers,
                          backbone_pred_layers):
    keys = jax.random.split(key, 8)
    enc_vals = make_mlp_params(keys[0], [vals_feat] + [hid_dim] * num_encode_layers)
    enc_cons = make_mlp_params(keys[1], [cons_feat] + [hid_dim] * num_encode_layers)

    convs = []
    ckey = keys[2]
    for _ in range(num_conv_layers):
        ckey, k1, k2, k3, k4 = jax.random.split(ckey, 5)
        s = 1.0 / jnp.sqrt(jnp.float32(hid_dim))
        convs.append(dict(
            c_wmsg=jax.random.normal(k1, (hid_dim, hid_dim), jnp.float32) * s,
            c_wself=jax.random.normal(k2, (hid_dim, hid_dim), jnp.float32) * s,
            c_b=jnp.zeros((1, hid_dim), jnp.float32),
            v_wmsg=jax.random.normal(k3, (hid_dim, hid_dim), jnp.float32) * s,
            v_wself=jax.random.normal(k4, (hid_dim, hid_dim), jnp.float32) * s,
            v_b=jnp.zeros((1, hid_dim), jnp.float32),
        ))

    backbone_readout = make_mlp_params(keys[3], [hid_dim] * (num_mlp_layers + 1))

    fc_nodes = ([] if backbone_pred_layers == 0
                else make_mlp_params(keys[4], [hid_dim] * (backbone_pred_layers + 1)))
    if num_pred_layers == 0:
        predictor, node_predictor = [], []          # torch.nn.Identity()
    else:
        predictor = make_mlp_params(keys[5], [hid_dim] * (num_pred_layers + 1))
        node_predictor = make_mlp_params(keys[6], [hid_dim] * (num_pred_layers + 1))

    return dict(
        encoder=dict(enc_vals=enc_vals, enc_cons=enc_cons, convs=convs,
                     readout=backbone_readout),
        fc_nodes=fc_nodes,
        predictor=predictor,
        node_predictor=node_predictor,
    )


def stack_padded_params(params, lane_pad=LANE):
    """Zero-pad every weight to (lane_pad, lane_pad) / bias to (1, lane_pad),
    stack into W[NW,P,P] (bf16) and B[NB,1,P] (f32), return the index struct."""
    weights, biases = [], []

    def pad2(x, rows, cols):
        return jnp.pad(x, ((0, rows - x.shape[0]), (0, cols - x.shape[1])))

    def add_w(w):
        weights.append(pad2(w, lane_pad, lane_pad))
        return len(weights) - 1

    def add_b(b):
        biases.append(pad2(b, 1, lane_pad))
        return len(biases) - 1

    def add_mlp(layers):
        return tuple((add_w(w), add_b(b)) for (w, b) in layers)

    enc = params["encoder"]
    enc_vals_ids = add_mlp(enc["enc_vals"])
    enc_cons_ids = add_mlp(enc["enc_cons"])

    conv_ids = []
    for l in enc["convs"]:
        conv_ids.append((add_w(l["c_wmsg"]), add_w(l["c_wself"]), add_b(l["c_b"]),
                         add_w(l["v_wmsg"]), add_w(l["v_wself"]), add_b(l["v_b"])))

    struct = dict(
        enc_vals=enc_vals_ids,
        enc_cons=enc_cons_ids,
        convs=tuple(conv_ids),
        readout=add_mlp(enc["readout"]),
        fc_nodes=add_mlp(params["fc_nodes"]),
        predictor=add_mlp(params["predictor"]),
        node_predictor=add_mlp(params["node_predictor"]),
    )
    W = jnp.stack(weights).astype(jnp.bfloat16)   # (NW, P, P) bf16 (VMEM-resident)
    B = jnp.stack(biases)                         # (NB, 1, P) f32
    return W, B, struct


# --------------------------------------------------------------------------- #
# Pure-JAX reference (same bf16/f32 mixed precision) for a correctness check
# --------------------------------------------------------------------------- #
def _ref_mlp(x, layers, final_relu=False):
    n = len(layers)
    for j, (w, b) in enumerate(layers):
        x = jnp.dot(x.astype(jnp.bfloat16), w.astype(jnp.bfloat16),
                    preferred_element_type=jnp.float32) + b
        if j < n - 1 or final_relu:
            x = jnp.maximum(x, 0.0)
    return x


def _ref_forward_single(p, vals, cons, adj):
    enc = p["encoder"]
    h_v = _ref_mlp(vals, enc["enc_vals"], final_relu=True)
    h_c = _ref_mlp(cons, enc["enc_cons"], final_relu=True)
    ab = adj.astype(jnp.bfloat16)
    for l in enc["convs"]:
        hv_b = h_v.astype(jnp.bfloat16)
        hc_b = h_c.astype(jnp.bfloat16)
        agg_c = jnp.dot(ab, hv_b, preferred_element_type=jnp.float32)
        h_c_new = jnp.maximum(
            jnp.dot(agg_c.astype(jnp.bfloat16), l["c_wmsg"].astype(jnp.bfloat16),
                    preferred_element_type=jnp.float32)
            + jnp.dot(hc_b, l["c_wself"].astype(jnp.bfloat16),
                      preferred_element_type=jnp.float32)
            + l["c_b"], 0.0)
        agg_v = jnp.dot(ab.T, hc_b, preferred_element_type=jnp.float32)
        h_v_new = jnp.maximum(
            jnp.dot(agg_v.astype(jnp.bfloat16), l["v_wmsg"].astype(jnp.bfloat16),
                    preferred_element_type=jnp.float32)
            + jnp.dot(hv_b, l["v_wself"].astype(jnp.bfloat16),
                      preferred_element_type=jnp.float32)
            + l["v_b"], 0.0)
        h_v, h_c = h_v_new, h_c_new
    n_total = h_v.shape[0] + h_c.shape[0]
    pooled = (jnp.sum(h_v, 0, keepdims=True)
              + jnp.sum(h_c, 0, keepdims=True)) / n_total
    obj = _ref_mlp(_ref_mlp(pooled, enc["readout"]), p["predictor"])
    h_all = jnp.concatenate([h_v, h_c], axis=0)
    node = _ref_mlp(_ref_mlp(h_all, p["fc_nodes"]), p["node_predictor"])
    return obj, node


# --------------------------------------------------------------------------- #
# Main
# --------------------------------------------------------------------------- #
if __name__ == "__main__":
    # small, deterministic synthetic batch of bipartite graphs (QP/MILP style)
    G = 4
    n_vals, n_cons = 12, 6
    vals_feat, cons_feat = 9, 5
    hid_dim = 32
    num_encode_layers = 2
    num_conv_layers = 2
    num_pred_layers = 2
    num_mlp_layers = 2
    backbone_pred_layers = 1

    key = jax.random.PRNGKey(0)
    k_data, k_params = jax.random.split(key)
    kv, kc, ka = jax.random.split(k_data, 3)

    vals_x = jax.random.normal(kv, (G, n_vals, vals_feat), jnp.float32)
    cons_x = jax.random.normal(kc, (G, n_cons, cons_feat), jnp.float32)
    adj = (jax.random.uniform(ka, (G, n_cons, n_vals)) < 0.3).astype(jnp.float32)

    logical_params = make_infograph_params(
        k_params, vals_feat, cons_feat, hid_dim, num_encode_layers,
        num_conv_layers, num_pred_layers, num_mlp_layers, backbone_pred_layers)
    W, B, struct = stack_padded_params(logical_params)

    fwd = jax.jit(
        lambda v, c, a: infograph_forward(W, B, struct, hid_dim, v, c, a))

    obj_emb, node_emb = fwd(vals_x, cons_x, adj)
    jax.block_until_ready(obj_emb)
    jax.block_until_ready(node_emb)

    assert obj_emb.shape == (G, hid_dim)
    assert node_emb.shape == (G, n_vals + n_cons, hid_dim)
    assert jnp.all(jnp.isfinite(obj_emb)) and jnp.all(jnp.isfinite(node_emb))

    # correctness check against a pure-JAX reference with the same precision
    obj_exp, node_exp = [], []
    for g in range(G):
        o, n = _ref_forward_single(logical_params, vals_x[g], cons_x[g], adj[g])
        obj_exp.append(o[0])
        node_exp.append(n)
    obj_exp = jnp.stack(obj_exp)
    node_exp = jnp.stack(node_exp)
    assert jnp.allclose(obj_emb, obj_exp, atol=5e-2, rtol=5e-2)
    assert jnp.allclose(node_emb, node_exp, atol=5e-2, rtol=5e-2)

    print("KERNEL_OK")
</pallas_src>

<mosaic_0001>
module attributes {stable_mosaic.version = 11 : i64} {
  func.func @_fused_forward_kernel(%arg0: i32, %arg1: memref<1x16x128xf32, #tpu.memory_space<vmem>>, %arg2: memref<1x8x128xf32, #tpu.memory_space<vmem>>, %arg3: memref<1x8x16xf32, #tpu.memory_space<vmem>>, %arg4: memref<1x16x8xf32, #tpu.memory_space<vmem>>, %arg5: memref<19x128x128xbf16, #tpu.memory_space<vmem>>, %arg6: memref<15x1x128xf32, #tpu.memory_space<vmem>>, %arg7: memref<1x1x128xf32, #tpu.memory_space<vmem>>, %arg8: memref<1x24x128xf32, #tpu.memory_space<vmem>>) attributes {dimension_semantics = [#tpu.dimension_semantics<parallel>], iteration_bounds = array<i64: 4>, scalar_prefetch = 0 : i64, scratch_operands = 0 : i64, tpu.core_type = #tpu.core_type<tc>, window_params = [{transform_indices = @transform_0, window_bounds = array<i64: 1, 16, 128>}, {transform_indices = @transform_1, window_bounds = array<i64: 1, 8, 128>}, {transform_indices = @transform_2, window_bounds = array<i64: 1, 8, 16>}, {transform_indices = @transform_3, window_bounds = array<i64: 1, 16, 8>}, {pipeline_mode = #tpu.pipeline_mode<synchronous>, transform_indices = @transform_4, window_bounds = array<i64: 19, 128, 128>}, {pipeline_mode = #tpu.pipeline_mode<synchronous>, transform_indices = @transform_5, window_bounds = array<i64: 15, 1, 128>}, {transform_indices = @transform_6, window_bounds = array<i64: 1, 1, 128>}, {transform_indices = @transform_7, window_bounds = array<i64: 1, 24, 128>}]} {
    %c0 = arith.constant 0 : index
    %c0_0 = arith.constant 0 : index
    %c0_1 = arith.constant 0 : index
    %0 = vector.load %arg1[%c0, %c0_0, %c0_1] : memref<1x16x128xf32, #tpu.memory_space<vmem>>, vector<1x16x128xf32>
    %1 = vector.shape_cast %0 : vector<1x16x128xf32> to vector<16x128xf32>
    %2 = arith.truncf %1 : vector<16x128xf32> to vector<16x128xbf16>
    %c0_2 = arith.constant 0 : index
    %c0_3 = arith.constant 0 : index
    %c0_4 = arith.constant 0 : index
    %3 = vector.load %arg5[%c0_2, %c0_3, %c0_4] : memref<19x128x128xbf16, #tpu.memory_space<vmem>>, vector<1x128x128xbf16>
    %4 = vector.shape_cast %3 : vector<1x128x128xbf16> to vector<128x128xbf16>
    %cst = arith.constant dense<0.000000e+00> : vector<16x128xf32>
    %5 = tpu.matmul %2, %4, %cst {dimension_numbers = #tpu.dot_dimension_numbers<[1], [0], [0], [1], [0, 0, 1, 1], [], []>} : vector<16x128xbf16>, vector<128x128xbf16>, vector<16x128xf32> -> vector<16x128xf32>
    %c0_5 = arith.constant 0 : index
    %c0_6 = arith.constant 0 : index
    %c0_7 = arith.constant 0 : index
    %6 = vector.load %arg6[%c0_5, %c0_6, %c0_7] : memref<15x1x128xf32, #tpu.memory_space<vmem>>, vector<1x1x128xf32>
    %7 = vector.shape_cast %6 : vector<1x1x128xf32> to vector<1x128xf32>
    %8 = vector.broadcast %7 : vector<1x128xf32> to vector<16x128xf32>
    %9 = arith.addf %5, %8 : vector<16x128xf32>
    %cst_8 = arith.constant 0.000000e+00 : f32
    %10 = vector.broadcast %cst_8 : f32 to vector<16x128xf32>
    %11 = arith.maximumf %9, %10 : vector<16x128xf32>
    %12 = arith.truncf %11 : vector<16x128xf32> to vector<16x128xbf16>
    %c1 = arith.constant 1 : index
    %c0_9 = arith.constant 0 : index
    %c0_10 = arith.constant 0 : index
    %13 = vector.load %arg5[%c1, %c0_9, %c0_10] : memref<19x128x128xbf16, #tpu.memory_space<vmem>>, vector<1x128x128xbf16>
    %14 = vector.shape_cast %13 : vector<1x128x128xbf16> to vector<128x128xbf16>
    %cst_11 = arith.constant dense<0.000000e+00> : vector<16x128xf32>
    %15 = tpu.matmul %12, %14, %cst_11 {dimension_numbers = #tpu.dot_dimension_numbers<[1], [0], [0], [1], [0, 0, 1, 1], [], []>} : vector<16x128xbf16>, vector<128x128xbf16>, vector<16x128xf32> -> vector<16x128xf32>
    %c1_12 = arith.constant 1 : index
    %c0_13 = arith.constant 0 : index
    %c0_14 = arith.constant 0 : index
    %16 = vector.load %arg6[%c1_12, %c0_13, %c0_14] : memref<15x1x128xf32, #tpu.memory_space<vmem>>, vector<1x1x128xf32>
    %17 = vector.shape_cast %16 : vector<1x1x128xf32> to vector<1x128xf32>
    %18 = vector.broadcast %17 : vector<1x128xf32> to vector<16x128xf32>
    %19 = arith.addf %15, %18 : vector<16x128xf32>
    %cst_15 = arith.constant 0.000000e+00 : f32
    %20 = vector.broadcast %cst_15 : f32 to vector<16x128xf32>
    %21 = arith.maximumf %19, %20 : vector<16x128xf32>
    %c0_16 = arith.constant 0 : index
    %c0_17 = arith.constant 0 : index
    %c0_18 = arith.constant 0 : index
    %22 = vector.load %arg2[%c0_16, %c0_17, %c0_18] : memref<1x8x128xf32, #tpu.memory_space<vmem>>, vector<1x8x128xf32>
    %23 = vector.shape_cast %22 : vector<1x8x128xf32> to vector<8x128xf32>
    %24 = arith.truncf %23 : vector<8x128xf32> to vector<8x128xbf16>
    %c2 = arith.constant 2 : index
    %c0_19 = arith.constant 0 : index
    %c0_20 = arith.constant 0 : index
    %25 = vector.load %arg5[%c2, %c0_19, %c0_20] : memref<19x128x128xbf16, #tpu.memory_space<vmem>>, vector<1x128x128xbf16>
    %26 = vector.shape_cast %25 : vector<1x128x128xbf16> to vector<128x128xbf16>
    %cst_21 = arith.constant dense<0.000000e+00> : vector<8x128xf32>
    %27 = tpu.matmul %24, %26, %cst_21 {dimension_numbers = #tpu.dot_dimension_numbers<[1], [0], [0], [1], [0, 0, 1, 1], [], []>} : vector<8x128xbf16>, vector<128x128xbf16>, vector<8x128xf32> -> vector<8x128xf32>
    %c2_22 = arith.constant 2 : index
    %c0_23 = arith.constant 0 : index
    %c0_24 = arith.constant 0 : index
    %28 = vector.load %arg6[%c2_22, %c0_23, %c0_24] : memref<15x1x128xf32, #tpu.memory_space<vmem>>, vector<1x1x128xf32>
    %29 = vector.shape_cast %28 : vector<1x1x128xf32> to vector<1x128xf32>
    %30 = vector.broadcast %29 : vector<1x128xf32> to vector<8x128xf32>
    %31 = arith.addf %27, %30 : vector<8x128xf32>
    %cst_25 = arith.constant 0.000000e+00 : f32
    %32 = vector.broadcast %cst_25 : f32 to vector<8x128xf32>
    %33 = arith.maximumf %31, %32 : vector<8x128xf32>
    %34 = arith.truncf %33 : vector<8x128xf32> to vector<8x128xbf16>
    %c3 = arith.constant 3 : index
    %c0_26 = arith.constant 0 : index
    %c0_27 = arith.constant 0 : index
    %35 = vector.load %arg5[%c3, %c0_26, %c0_27] : memref<19x128x128xbf16, #tpu.memory_space<vmem>>, vector<1x128x128xbf16>
    %36 = vector.shape_cast %35 : vector<1x128x128xbf16> to vector<128x128xbf16>
    %cst_28 = arith.constant dense<0.000000e+00> : vector<8x128xf32>
    %37 = tpu.matmul %34, %36, %cst_28 {dimension_numbers = #tpu.dot_dimension_numbers<[1], [0], [0], [1], [0, 0, 1, 1], [], []>} : vector<8x128xbf16>, vector<128x128xbf16>, vector<8x128xf32> -> vector<8x128xf32>
    %c3_29 = arith.constant 3 : index
    %c0_30 = arith.constant 0 : index
    %c0_31 = arith.constant 0 : index
    %38 = vector.load %arg6[%c3_29, %c0_30, %c0_31] : memref<15x1x128xf32, #tpu.memory_space<vmem>>, vector<1x1x128xf32>
    %39 = vector.shape_cast %38 : vector<1x1x128xf32> to vector<1x128xf32>
    %40 = vector.broadcast %39 : vector<1x128xf32> to vector<8x128xf32>
    %41 = arith.addf %37, %40 : vector<8x128xf32>
    %cst_32 = arith.constant 0.000000e+00 : f32
    %42 = vector.broadcast %cst_32 : f32 to vector<8x128xf32>
    %43 = arith.maximumf %41, %42 : vector<8x128xf32>
    %c0_33 = arith.constant 0 : index
    %c0_34 = arith.constant 0 : index
    %c0_35 = arith.constant 0 : index
    %44 = vector.load %arg3[%c0_33, %c0_34, %c0_35] : memref<1x8x16xf32, #tpu.memory_space<vmem>>, vector<1x8x16xf32>
    %45 = vector.shape_cast %44 : vector<1x8x16xf32> to vector<8x16xf32>
    %46 = arith.truncf %45 : vector<8x16xf32> to vector<8x16xbf16>
    %c0_36 = arith.constant 0 : index
    %c0_37 = arith.constant 0 : index
    %c0_38 = arith.constant 0 : index
    %47 = vector.load %arg4[%c0_36, %c0_37, %c0_38] : memref<1x16x8xf32, #tpu.memory_space<vmem>>, vector<1x16x8xf32>
    %48 = vector.shape_cast %47 : vector<1x16x8xf32> to vector<16x8xf32>
    %49 = arith.truncf %48 : vector<16x8xf32> to vector<16x8xbf16>
    %50 = arith.truncf %21 : vector<16x128xf32> to vector<16x128xbf16>
    %51 = arith.truncf %43 : vector<8x128xf32> to vector<8x128xbf16>
    %cst_39 = arith.constant dense<0.000000e+00> : vector<8x128xf32>
    %52 = tpu.matmul %46, %50, %cst_39 {dimension_numbers = #tpu.dot_dimension_numbers<[1], [0], [0], [1], [0, 0, 1, 1], [], []>} : vector<8x16xbf16>, vector<16x128xbf16>, vector<8x128xf32> -> vector<8x128xf32>
    %53 = arith.truncf %52 : vector<8x128xf32> to vector<8x128xbf16>
    %c4 = arith.constant 4 : index
    %c0_40 = arith.constant 0 : index
    %c0_41 = arith.constant 0 : index
    %54 = vector.load %arg5[%c4, %c0_40, %c0_41] : memref<19x128x128xbf16, #tpu.memory_space<vmem>>, vector<1x128x128xbf16>
    %55 = vector.shape_cast %54 : vector<1x128x128xbf16> to vector<128x128xbf16>
    %cst_42 = arith.constant dense<0.000000e+00> : vector<8x128xf32>
    %56 = tpu.matmul %53, %55, %cst_42 {dimension_numbers = #tpu.dot_dimension_numbers<[1], [0], [0], [1], [0, 0, 1, 1], [], []>} : vector<8x128xbf16>, vector<128x128xbf16>, vector<8x128xf32> -> vector<8x128xf32>
    %c5 = arith.constant 5 : index
    %c0_43 = arith.constant 0 : index
    %c0_44 = arith.constant 0 : index
    %57 = vector.load %arg5[%c5, %c0_43, %c0_44] : memref<19x128x128xbf16, #tpu.memory_space<vmem>>, vector<1x128x128xbf16>
    %58 = vector.shape_cast %57 : vector<1x128x128xbf16> to vector<128x128xbf16>
    %cst_45 = arith.constant dense<0.000000e+00> : vector<8x128xf32>
    %59 = tpu.matmul %51, %58, %cst_45 {dimension_numbers = #tpu.dot_dimension_numbers<[1], [0], [0], [1], [0, 0, 1, 1], [], []>} : vector<8x128xbf16>, vector<128x128xbf16>, vector<8x128xf32> -> vector<8x128xf32>
    %60 = arith.addf %56, %59 : vector<8x128xf32>
    %c4_46 = arith.constant 4 : index
    %c0_47 = arith.constant 0 : index
    %c0_48 = arith.constant 0 : index
    %61 = vector.load %arg6[%c4_46, %c0_47, %c0_48] : memref<15x1x128xf32, #tpu.memory_space<vmem>>, vector<1x1x128xf32>
    %62 = vector.shape_cast %61 : vector<1x1x128xf32> to vector<1x128xf32>
    %63 = vector.broadcast %62 : vector<1x128xf32> to vector<8x128xf32>
    %64 = arith.addf %60, %63 : vector<8x128xf32>
    %cst_49 = arith.constant 0.000000e+00 : f32
    %65 = vector.broadcast %cst_49 : f32 to vector<8x128xf32>
    %66 = arith.maximumf %64, %65 : vector<8x128xf32>
    %cst_50 = arith.constant dense<0.000000e+00> : vector<16x128xf32>
    %67 = tpu.matmul %49, %51, %cst_50 {dimension_numbers = #tpu.dot_dimension_numbers<[1], [0], [0], [1], [0, 0, 1, 1], [], []>} : vector<16x8xbf16>, vector<8x128xbf16>, vector<16x128xf32> -> vector<16x128xf32>
    %68 = arith.truncf %67 : vector<16x128xf32> to vector<16x128xbf16>
    %c6 = arith.constant 6 : index
    %c0_51 = arith.constant 0 : index
    %c0_52 = arith.constant 0 : index
    %69 = vector.load %arg5[%c6, %c0_51, %c0_52] : memref<19x128x128xbf16, #tpu.memory_space<vmem>>, vector<1x128x128xbf16>
    %70 = vector.shape_cast %69 : vector<1x128x128xbf16> to vector<128x128xbf16>
    %cst_53 = arith.constant dense<0.000000e+00> : vector<16x128xf32>
    %71 = tpu.matmul %68, %70, %cst_53 {dimension_numbers = #tpu.dot_dimension_numbers<[1], [0], [0], [1], [0, 0, 1, 1], [], []>} : vector<16x128xbf16>, vector<128x128xbf16>, vector<16x128xf32> -> vector<16x128xf32>
    %c7 = arith.constant 7 : index
    %c0_54 = arith.constant 0 : index
    %c0_55 = arith.constant 0 : index
    %72 = vector.load %arg5[%c7, %c0_54, %c0_55] : memref<19x128x128xbf16, #tpu.memory_space<vmem>>, vector<1x128x128xbf16>
    %73 = vector.shape_cast %72 : vector<1x128x128xbf16> to vector<128x128xbf16>
    %cst_56 = arith.constant dense<0.000000e+00> : vector<16x128xf32>
    %74 = tpu.matmul %50, %73, %cst_56 {dimension_numbers = #tpu.dot_dimension_numbers<[1], [0], [0], [1], [0, 0, 1, 1], [], []>} : vector<16x128xbf16>, vector<128x128xbf16>, vector<16x128xf32> -> vector<16x128xf32>
    %75 = arith.addf %71, %74 : vector<16x128xf32>
    %c5_57 = arith.constant 5 : index
    %c0_58 = arith.constant 0 : index
    %c0_59 = arith.constant 0 : index
    %76 = vector.load %arg6[%c5_57, %c0_58, %c0_59] : memref<15x1x128xf32, #tpu.memory_space<vmem>>, vector<1x1x128xf32>
    %77 = vector.shape_cast %76 : vector<1x1x128xf32> to vector<1x128xf32>
    %78 = vector.broadcast %77 : vector<1x128xf32> to vector<16x128xf32>
    %79 = arith.addf %75, %78 : vector<16x128xf32>
    %cst_60 = arith.constant 0.000000e+00 : f32
    %80 = vector.broadcast %cst_60 : f32 to vector<16x128xf32>
    %81 = arith.maximumf %79, %80 : vector<16x128xf32>
    %82 = arith.truncf %81 : vector<16x128xf32> to vector<16x128xbf16>
    %83 = arith.truncf %66 : vector<8x128xf32> to vector<8x128xbf16>
    %cst_61 = arith.constant dense<0.000000e+00> : vector<8x128xf32>
    %84 = tpu.matmul %46, %82, %cst_61 {dimension_numbers = #tpu.dot_dimension_numbers<[1], [0], [0], [1], [0, 0, 1, 1], [], []>} : vector<8x16xbf16>, vector<16x128xbf16>, vector<8x128xf32> -> vector<8x128xf32>
    %85 = arith.truncf %84 : vector<8x128xf32> to vector<8x128xbf16>
    %c8 = arith.constant 8 : index
    %c0_62 = arith.constant 0 : index
    %c0_63 = arith.constant 0 : index
    %86 = vector.load %arg5[%c8, %c0_62, %c0_63] : memref<19x128x128xbf16, #tpu.memory_space<vmem>>, vector<1x128x128xbf16>
    %87 = vector.shape_cast %86 : vector<1x128x128xbf16> to vector<128x128xbf16>
    %cst_64 = arith.constant dense<0.000000e+00> : vector<8x128xf32>
    %88 = tpu.matmul %85, %87, %cst_64 {dimension_numbers = #tpu.dot_dimension_numbers<[1], [0], [0], [1], [0, 0, 1, 1], [], []>} : vector<8x128xbf16>, vector<128x128xbf16>, vector<8x128xf32> -> vector<8x128xf32>
    %c9 = arith.constant 9 : index
    %c0_65 = arith.constant 0 : index
    %c0_66 = arith.constant 0 : index
    %89 = vector.load %arg5[%c9, %c0_65, %c0_66] : memref<19x128x128xbf16, #tpu.memory_space<vmem>>, vector<1x128x128xbf16>
    %90 = vector.shape_cast %89 : vector<1x128x128xbf16> to vector<128x128xbf16>
    %cst_67 = arith.constant dense<0.000000e+00> : vector<8x128xf32>
    %91 = tpu.matmul %83, %90, %cst_67 {dimension_numbers = #tpu.dot_dimension_numbers<[1], [0], [0], [1], [0, 0, 1, 1], [], []>} : vector<8x128xbf16>, vector<128x128xbf16>, vector<8x128xf32> -> vector<8x128xf32>
    %92 = arith.addf %88, %91 : vector<8x128xf32>
    %c6_68 = arith.constant 6 : index
    %c0_69 = arith.constant 0 : index
    %c0_70 = arith.constant 0 : index
    %93 = vector.load %arg6[%c6_68, %c0_69, %c0_70] : memref<15x1x128xf32, #tpu.memory_space<vmem>>, vector<1x1x128xf32>
    %94 = vector.shape_cast %93 : vector<1x1x128xf32> to vector<1x128xf32>
    %95 = vector.broadcast %94 : vector<1x128xf32> to vector<8x128xf32>
    %96 = arith.addf %92, %95 : vector<8x128xf32>
    %cst_71 = arith.constant 0.000000e+00 : f32
    %97 = vector.broadcast %cst_71 : f32 to vector<8x128xf32>
    %98 = arith.maximumf %96, %97 : vector<8x128xf32>
    %cst_72 = arith.constant dense<0.000000e+00> : vector<16x128xf32>
    %99 = tpu.matmul %49, %83, %cst_72 {dimension_numbers = #tpu.dot_dimension_numbers<[1], [0], [0], [1], [0, 0, 1, 1], [], []>} : vector<16x8xbf16>, vector<8x128xbf16>, vector<16x128xf32> -> vector<16x128xf32>
    %100 = arith.truncf %99 : vector<16x128xf32> to vector<16x128xbf16>
    %c10 = arith.constant 10 : index
    %c0_73 = arith.constant 0 : index
    %c0_74 = arith.constant 0 : index
    %101 = vector.load %arg5[%c10, %c0_73, %c0_74] : memref<19x128x128xbf16, #tpu.memory_space<vmem>>, vector<1x128x128xbf16>
    %102 = vector.shape_cast %101 : vector<1x128x128xbf16> to vector<128x128xbf16>
    %cst_75 = arith.constant dense<0.000000e+00> : vector<16x128xf32>
    %103 = tpu.matmul %100, %102, %cst_75 {dimension_numbers = #tpu.dot_dimension_numbers<[1], [0], [0], [1], [0, 0, 1, 1], [], []>} : vector<16x128xbf16>, vector<128x128xbf16>, vector<16x128xf32> -> vector<16x128xf32>
    %c11 = arith.constant 11 : index
    %c0_76 = arith.constant 0 : index
    %c0_77 = arith.constant 0 : index
    %104 = vector.load %arg5[%c11, %c0_76, %c0_77] : memref<19x128x128xbf16, #tpu.memory_space<vmem>>, vector<1x128x128xbf16>
    %105 = vector.shape_cast %104 : vector<1x128x128xbf16> to vector<128x128xbf16>
    %cst_78 = arith.constant dense<0.000000e+00> : vector<16x128xf32>
    %106 = tpu.matmul %82, %105, %cst_78 {dimension_numbers = #tpu.dot_dimension_numbers<[1], [0], [0], [1], [0, 0, 1, 1], [], []>} : vector<16x128xbf16>, vector<128x128xbf16>, vector<16x128xf32> -> vector<16x128xf32>
    %107 = arith.addf %103, %106 : vector<16x128xf32>
    %c7_79 = arith.constant 7 : index
    %c0_80 = arith.constant 0 : index
    %c0_81 = arith.constant 0 : index
    %108 = vector.load %arg6[%c7_79, %c0_80, %c0_81] : memref<15x1x128xf32, #tpu.memory_space<vmem>>, vector<1x1x128xf32>
    %109 = vector.shape_cast %108 : vector<1x1x128xf32> to vector<1x128xf32>
    %110 = vector.broadcast %109 : vector<1x128xf32> to vector<16x128xf32>
    %111 = arith.addf %107, %110 : vector<16x128xf32>
    %cst_82 = arith.constant 0.000000e+00 : f32
    %112 = vector.broadcast %cst_82 : f32 to vector<16x128xf32>
    %113 = arith.maximumf %111, %112 : vector<16x128xf32>
    %114 = tpu.concatenate %113, %98 in 0 : vector<16x128xf32>, vector<8x128xf32> -> vector<24x128xf32>
    %115 = tpu.iota {dimensions = array<i32: 0>} : vector<24x128xi32>
    %c12_i32 = arith.constant 12 : i32
    %116 = vector.broadcast %c12_i32 : i32 to vector<24x128xi32>
    %117 = arith.cmpi slt, %115, %116 : vector<24x128xi32>
    %c16_i32 = arith.constant 16 : i32
    %118 = vector.broadcast %c16_i32 : i32 to vector<24x128xi32>
    %119 = arith.cmpi sge, %115, %118 : vector<24x128xi32>
    %c22_i32 = arith.constant 22 : i32
    %120 = vector.broadcast %c22_i32 : i32 to vector<24x128xi32>
    %121 = arith.cmpi slt, %115, %120 : vector<24x128xi32>
    %122 = arith.andi %119, %121 : vector<24x128xi1>
    %123 = arith.ori %117, %122 : vector<24x128xi1>
    %cst_83 = arith.constant 0.000000e+00 : f32
    %124 = vector.broadcast %cst_83 : f32 to vector<24x128xf32>
    %125 = arith.select %123, %114, %124 : vector<24x128xi1>, vector<24x128xf32>
    %cst_84 = arith.constant dense<0.000000e+00> : vector<128xf32>
    %126 = vector.multi_reduction <add>, %125, %cst_84 [0] : vector<24x128xf32> to vector<128xf32>
    %127 = vector.shape_cast %126 : vector<128xf32> to vector<1x128xf32>
    %cst_85 = arith.constant 0.055555556 : f32
    %128 = vector.broadcast %cst_85 : f32 to vector<1x128xf32>
    %129 = arith.mulf %127, %128 : vector<1x128xf32>
    %130 = arith.truncf %129 : vector<1x128xf32> to vector<1x128xbf16>
    %c12 = arith.constant 12 : index
    %c0_86 = arith.constant 0 : index
    %c0_87 = arith.constant 0 : index
    %131 = vector.load %arg5[%c12, %c0_86, %c0_87] : memref<19x128x128xbf16, #tpu.memory_space<vmem>>, vector<1x128x128xbf16>
    %132 = vector.shape_cast %131 : vector<1x128x128xbf16> to vector<128x128xbf16>
    %cst_88 = arith.constant dense<0.000000e+00> : vector<1x128xf32>
    %133 = tpu.matmul %130, %132, %cst_88 {dimension_numbers = #tpu.dot_dimension_numbers<[1], [0], [0], [1], [0, 0, 1, 1], [], []>} : vector<1x128xbf16>, vector<128x128xbf16>, vector<1x128xf32> -> vector<1x128xf32>
    %c8_89 = arith.constant 8 : index
    %c0_90 = arith.constant 0 : index
    %c0_91 = arith.constant 0 : index
    %134 = vector.load %arg6[%c8_89, %c0_90, %c0_91] : memref<15x1x128xf32, #tpu.memory_space<vmem>>, vector<1x1x128xf32>
    %135 = vector.shape_cast %134 : vector<1x1x128xf32> to vector<1x128xf32>
    %136 = arith.addf %133, %135 : vector<1x128xf32>
    %cst_92 = arith.constant 0.000000e+00 : f32
    %137 = vector.broadcast %cst_92 : f32 to vector<1x128xf32>
    %138 = arith.maximumf %136, %137 : vector<1x128xf32>
    %139 = arith.truncf %138 : vector<1x128xf32> to vector<1x128xbf16>
    %c13 = arith.constant 13 : index
    %c0_93 = arith.constant 0 : index
    %c0_94 = arith.constant 0 : index
    %140 = vector.load %arg5[%c13, %c0_93, %c0_94] : memref<19x128x128xbf16, #tpu.memory_space<vmem>>, vector<1x128x128xbf16>
    %141 = vector.shape_cast %140 : vector<1x128x128xbf16> to vector<128x128xbf16>
    %cst_95 = arith.constant dense<0.000000e+00> : vector<1x128xf32>
    %142 = tpu.matmul %139, %141, %cst_95 {dimension_numbers = #tpu.dot_dimension_numbers<[1], [0], [0], [1], [0, 0, 1, 1], [], []>} : vector<1x128xbf16>, vector<128x128xbf16>, vector<1x128xf32> -> vector<1x128xf32>
    %c9_96 = arith.constant 9 : index
    %c0_97 = arith.constant 0 : index
    %c0_98 = arith.constant 0 : index
    %143 = vector.load %arg6[%c9_96, %c0_97, %c0_98] : memref<15x1x128xf32, #tpu.memory_space<vmem>>, vector<1x1x128xf32>
    %144 = vector.shape_cast %143 : vector<1x1x128xf32> to vector<1x128xf32>
    %145 = arith.addf %142, %144 : vector<1x128xf32>
    %146 = arith.truncf %145 : vector<1x128xf32> to vector<1x128xbf16>
    %c15 = arith.constant 15 : index
    %c0_99 = arith.constant 0 : index
    %c0_100 = arith.constant 0 : index
    %147 = vector.load %arg5[%c15, %c0_99, %c0_100] : memref<19x128x128xbf16, #tpu.memory_space<vmem>>, vector<1x128x128xbf16>
    %148 = vector.shape_cast %147 : vector<1x128x128xbf16> to vector<128x128xbf16>
    %cst_101 = arith.constant dense<0.000000e+00> : vector<1x128xf32>
    %149 = tpu.matmul %146, %148, %cst_101 {dimension_numbers = #tpu.dot_dimension_numbers<[1], [0], [0], [1], [0, 0, 1, 1], [], []>} : vector<1x128xbf16>, vector<128x128xbf16>, vector<1x128xf32> -> vector<1x128xf32>
    %c11_102 = arith.constant 11 : index
    %c0_103 = arith.constant 0 : index
    %c0_104 = arith.constant 0 : index
    %150 = vector.load %arg6[%c11_102, %c0_103, %c0_104] : memref<15x1x128xf32, #tpu.memory_space<vmem>>, vector<1x1x128xf32>
    %151 = vector.shape_cast %150 : vector<1x1x128xf32> to vector<1x128xf32>
    %152 = arith.addf %149, %151 : vector<1x128xf32>
    %cst_105 = arith.constant 0.000000e+00 : f32
    %153 = vector.broadcast %cst_105 : f32 to vector<1x128xf32>
    %154 = arith.maximumf %152, %153 : vector<1x128xf32>
    %155 = arith.truncf %154 : vector<1x128xf32> to vector<1x128xbf16>
    %c16 = arith.constant 16 : index
    %c0_106 = arith.constant 0 : index
    %c0_107 = arith.constant 0 : index
    %156 = vector.load %arg5[%c16, %c0_106, %c0_107] : memref<19x128x128xbf16, #tpu.memory_space<vmem>>, vector<1x128x128xbf16>
    %157 = vector.shape_cast %156 : vector<1x128x128xbf16> to vector<128x128xbf16>
    %cst_108 = arith.constant dense<0.000000e+00> : vector<1x128xf32>
    %158 = tpu.matmul %155, %157, %cst_108 {dimension_numbers = #tpu.dot_dimension_numbers<[1], [0], [0], [1], [0, 0, 1, 1], [], []>} : vector<1x128xbf16>, vector<128x128xbf16>, vector<1x128xf32> -> vector<1x128xf32>
    %c12_109 = arith.constant 12 : index
    %c0_110 = arith.constant 0 : index
    %c0_111 = arith.constant 0 : index
    %159 = vector.load %arg6[%c12_109, %c0_110, %c0_111] : memref<15x1x128xf32, #tpu.memory_space<vmem>>, vector<1x1x128xf32>
    %160 = vector.shape_cast %159 : vector<1x1x128xf32> to vector<1x128xf32>
    %161 = arith.addf %158, %160 : vector<1x128xf32>
    %c0_112 = arith.constant 0 : index
    %c0_113 = arith.constant 0 : index
    %c0_114 = arith.constant 0 : index
    %162 = vector.load %arg7[%c0_112, %c0_113, %c0_114] : memref<1x1x128xf32, #tpu.memory_space<vmem>>, vector<1x1x128xf32>
    %163 = vector.shape_cast %162 : vector<1x1x128xf32> to vector<1x128xf32>
    %164 = vector.shape_cast %161 : vector<1x128xf32> to vector<1x1x128xf32>
    tpu.vector_store %arg7[%c0_112, %c0_113, %c0_114], %164 {strides = array<i32>} : memref<1x1x128xf32, #tpu.memory_space<vmem>>, vector<1x1x128xf32>,
    %165 = arith.truncf %114 : vector<24x128xf32> to vector<24x128xbf16>
    %c14 = arith.constant 14 : index
    %c0_115 = arith.constant 0 : index
    %c0_116 = arith.constant 0 : index
    %166 = vector.load %arg5[%c14, %c0_115, %c0_116] : memref<19x128x128xbf16, #tpu.memory_space<vmem>>, vector<1x128x128xbf16>
    %167 = vector.shape_cast %166 : vector<1x128x128xbf16> to vector<128x128xbf16>
    %cst_117 = arith.constant dense<0.000000e+00> : vector<24x128xf32>
    %168 = tpu.matmul %165, %167, %cst_117 {dimension_numbers = #tpu.dot_dimension_numbers<[1], [0], [0], [1], [0, 0, 1, 1], [], []>} : vector<24x128xbf16>, vector<128x128xbf16>, vector<24x128xf32> -> vector<24x128xf32>
    %c10_118 = arith.constant 10 : index
    %c0_119 = arith.constant 0 : index
    %c0_120 = arith.constant 0 : index
    %169 = vector.load %arg6[%c10_118, %c0_119, %c0_120] : memref<15x1x128xf32, #tpu.memory_space<vmem>>, vector<1x1x128xf32>
    %170 = vector.shape_cast %169 : vector<1x1x128xf32> to vector<1x128xf32>
    %171 = vector.broadcast %170 : vector<1x128xf32> to vector<24x128xf32>
    %172 = arith.addf %168, %171 : vector<24x128xf32>
    %173 = arith.truncf %172 : vector<24x128xf32> to vector<24x128xbf16>
    %c17 = arith.constant 17 : index
    %c0_121 = arith.constant 0 : index
    %c0_122 = arith.constant 0 : index
    %174 = vector.load %arg5[%c17, %c0_121, %c0_122] : memref<19x128x128xbf16, #tpu.memory_space<vmem>>, vector<1x128x128xbf16>
    %175 = vector.shape_cast %174 : vector<1x128x128xbf16> to vector<128x128xbf16>
    %cst_123 = arith.constant dense<0.000000e+00> : vector<24x128xf32>
    %176 = tpu.matmul %173, %175, %cst_123 {dimension_numbers = #tpu.dot_dimension_numbers<[1], [0], [0], [1], [0, 0, 1, 1], [], []>} : vector<24x128xbf16>, vector<128x128xbf16>, vector<24x128xf32> -> vector<24x128xf32>
    %c13_124 = arith.constant 13 : index
    %c0_125 = arith.constant 0 : index
    %c0_126 = arith.constant 0 : index
    %177 = vector.load %arg6[%c13_124, %c0_125, %c0_126] : memref<15x1x128xf32, #tpu.memory_space<vmem>>, vector<1x1x128xf32>
    %178 = vector.shape_cast %177 : vector<1x1x128xf32> to vector<1x128xf32>
    %179 = vector.broadcast %178 : vector<1x128xf32> to vector<24x128xf32>
    %180 = arith.addf %176, %179 : vector<24x128xf32>
    %cst_127 = arith.constant 0.000000e+00 : f32
    %181 = vector.broadcast %cst_127 : f32 to vector<24x128xf32>
    %182 = arith.maximumf %180, %181 : vector<24x128xf32>
    %183 = arith.truncf %182 : vector<24x128xf32> to vector<24x128xbf16>
    %c18 = arith.constant 18 : index
    %c0_128 = arith.constant 0 : index
    %c0_129 = arith.constant 0 : index
    %184 = vector.load %arg5[%c18, %c0_128, %c0_129] : memref<19x128x128xbf16, #tpu.memory_space<vmem>>, vector<1x128x128xbf16>
    %185 = vector.shape_cast %184 : vector<1x128x128xbf16> to vector<128x128xbf16>
    %cst_130 = arith.constant dense<0.000000e+00> : vector<24x128xf32>
    %186 = tpu.matmul %183, %185, %cst_130 {dimension_numbers = #tpu.dot_dimension_numbers<[1], [0], [0], [1], [0, 0, 1, 1], [], []>} : vector<24x128xbf16>, vector<128x128xbf16>, vector<24x128xf32> -> vector<24x128xf32>
    %c14_131 = arith.constant 14 : index
    %c0_132 = arith.constant 0 : index
    %c0_133 = arith.constant 0 : index
    %187 = vector.load %arg6[%c14_131, %c0_132, %c0_133] : memref<15x1x128xf32, #tpu.memory_space<vmem>>, vector<1x1x128xf32>
    %188 = vector.shape_cast %187 : vector<1x1x128xf32> to vector<1x128xf32>
    %189 = vector.broadcast %188 : vector<1x128xf32> to vector<24x128xf32>
    %190 = arith.addf %186, %189 : vector<24x128xf32>
    %c0_134 = arith.constant 0 : index
    %c0_135 = arith.constant 0 : index
    %c0_136 = arith.constant 0 : index
    %191 = vector.load %arg8[%c0_134, %c0_135, %c0_136] : memref<1x24x128xf32, #tpu.memory_space<vmem>>, vector<1x24x128xf32>
    %192 = vector.shape_cast %191 : vector<1x24x128xf32> to vector<24x128xf32>
    %193 = vector.shape_cast %190 : vector<24x128xf32> to vector<1x24x128xf32>
    tpu.vector_store %arg8[%c0_134, %c0_135, %c0_136], %193 {strides = array<i32>} : memref<1x24x128xf32, #tpu.memory_space<vmem>>, vector<1x24x128xf32>,
    return
  }
  func.func @transform_0(%arg0: i32) -> (i32, i32, i32) {
    %c0_i32 = arith.constant 0 : i32
    %c0_i32_0 = arith.constant 0 : i32
    %c0_i32_1 = arith.constant 0 : i32
    return %arg0, %c0_i32, %c0_i32_0 : i32, i32, i32
  }
  func.func @transform_1(%arg0: i32) -> (i32, i32, i32) {
    %c0_i32 = arith.constant 0 : i32
    %c0_i32_0 = arith.constant 0 : i32
    %c0_i32_1 = arith.constant 0 : i32
    return %arg0, %c0_i32, %c0_i32_0 : i32, i32, i32
  }
  func.func @transform_2(%arg0: i32) -> (i32, i32, i32) {
    %c0_i32 = arith.constant 0 : i32
    %c0_i32_0 = arith.constant 0 : i32
    %c0_i32_1 = arith.constant 0 : i32
    return %arg0, %c0_i32, %c0_i32_0 : i32, i32, i32
  }
  func.func @transform_3(%arg0: i32) -> (i32, i32, i32) {
    %c0_i32 = arith.constant 0 : i32
    %c0_i32_0 = arith.constant 0 : i32
    %c0_i32_1 = arith.constant 0 : i32
    return %arg0, %c0_i32, %c0_i32_0 : i32, i32, i32
  }
  func.func @transform_4(%arg0: i32) -> (i32, i32, i32) {
    %c0_i32 = arith.constant 0 : i32
    %c0_i32_0 = arith.constant 0 : i32
    %c0_i32_1 = arith.constant 0 : i32
    %c0_i32_2 = arith.constant 0 : i32
    return %c0_i32, %c0_i32_0, %c0_i32_1 : i32, i32, i32
  }
  func.func @transform_5(%arg0: i32) -> (i32, i32, i32) {
    %c0_i32 = arith.constant 0 : i32
    %c0_i32_0 = arith.constant 0 : i32
    %c0_i32_1 = arith.constant 0 : i32
    %c0_i32_2 = arith.constant 0 : i32
    return %c0_i32, %c0_i32_0, %c0_i32_1 : i32, i32, i32
  }
  func.func @transform_6(%arg0: i32) -> (i32, i32, i32) {
    %c0_i32 = arith.constant 0 : i32
    %c0_i32_0 = arith.constant 0 : i32
    %c0_i32_1 = arith.constant 0 : i32
    return %arg0, %c0_i32, %c0_i32_0 : i32, i32, i32
  }
  func.func @transform_7(%arg0: i32) -> (i32, i32, i32) {
    %c0_i32 = arith.constant 0 : i32
    %c0_i32_0 = arith.constant 0 : i32
    %c0_i32_1 = arith.constant 0 : i32
    return %arg0, %c0_i32, %c0_i32_0 : i32, i32, i32
  }
}

</mosaic_0001>

<bundles_post_ra>
// kernel: _lambda_.1
= control target key start
LH: loop header
LB: loop body
LE: loop exit
PB: predicated region body
PF: predicated region fallthrough
CT: control target
= control target key end

     0   :  { %13 = vsyncpa [#allocation3], 0  ;;  %s4405_s0 = inlined_call_operand.vmem [shape: f32[4,16,128], index: 0, kind: input, shape index: {}]   ;;  %s4406_s1 = inlined_call_operand.vmem [shape: f32[4,8,128], index: 1, kind: input, shape index: {}]   ;;  %s4407_s2 = inlined_call_operand.vmem [shape: f32[4,8,16], index: 2, kind: input, shape index: {}]   ;;  %s4408_s3 = inlined_call_operand.vmem [shape: f32[4,16,8], index: 3, kind: input, shape index: {}]   ;;  %s4409_s4 = inlined_call_operand.hbm [shape: bf16[19,128,128], index: 4, kind: input, shape index: {}]   ;;  %s4410_s5 = inlined_call_operand.vmem [shape: f32[15,1,128], index: 5, kind: input, shape index: {}]   ;;  %s4411_s6 = inlined_call_operand.hbm [shape: f32[4,1,128], index: 6, kind: output, shape index: {0}]   ;;  %s4412_s7 = inlined_call_operand.vmem [shape: f32[4,24,128], index: 7, kind: output, shape index: {1}]  }
   0x1   :  { %14 = vsyncpa [#allocation4], 0 }
   0x2   :  { %16 = vsyncpa [#allocation4 + $0x1], 0  ;;  %s4022_s24 = smov 0   ;;  %s4024_s25 = smov 0  }
   0x3   :  { %s4026_s26 = smov 0   ;;  %s4028_s27 = smov 0  }
   0x4 LB: > { %s4043_s28 = sadd.s32 4294967295, %s3974_s27   ;;  %s2892_s29 = sadd.s32 4294967294, %s3974_s27   ;;  %s3974_s27 = sphi %s4028_s27, %s4420_s27   ;;  %s3970_s26 = sphi %s4026_s26, %s4419_s26   ;;  %s3966_s25 = sphi %s4024_s25, %s4418_s25   ;;  %s3962_s24 = sphi %s4022_s24, %s4417_s24  }
   0x5   : > { %s4047_s30 = sadd.s32 1, %s3974_s27   ;;  %s175_s8 = sadd.s32 1, %s3970_s26 }
   0x6   : > { %s172_s9 = ssub.s32 %s3974_s27, %s4047_s30  ;;  %p185_p0 = scmp.ne.s32.totalorder %s3970_s26, %s3966_s25 }
   0x7   : > { %p173_p1 = scmp.eq.s32.totalorder %s172_s9, 0  ;;  %p186_p2 = scmp.eq.s32.totalorder %s4043_s28, 3 }
   0x8   : > { %p191_p3 = scmp.ne.s32.totalorder %s3966_s25, %s3962_s24  ;;  %p192_p4 = scmp.eq.s32.totalorder %s2892_s29, 3 }
   0x9   : > { %s4058_s10 = scalar_select %p173_p1, %s3970_s26, %s175_s8  }
   0xa   : > { %p4060_p5 = por %p186_p2, %p185_p0  ;;  %p4064_p6 = por %p192_p4, %p191_p3 }
   0xb   : > { %p2893_p7 = scmp.ge.s32.totalorder %s3974_s27, 1  ;;  %p225_p8 = scmp.lt.s32.totalorder %s3974_s27, 5 }
   0xc   : > { %s4414_s12 = scalar_select %p4064_p6, 1, 0 }
   0xd   : > { %p3692_p9 = scmp.eq.s32.totalorder %s4043_s28, 0  ;;  %p4071_p10 = pnand %p2893_p7, %p225_p8 }
   0xe   : > { %s3976_s14 = smov [#allocation2]  }
   0xf   : > { %s237_s15 = sshll.u32 %s3976_s14, 4  ;;  %p3684_p11 = pneg %p4071_p10  ;;  %s238_s15 = int_to_ptr.vmem [resolvable:$true] %s237_s15 }
  0x10   : > { %s3895_s16 = scalar_lea.vmem %s238_s15, 19456  ;;  %p3903_p3 = scmp.lt.s32.totalorder %s238_s15, %s238_s15 }
  0x11   : > { %p3685_p12 = pnand %p3692_p9, %p3684_p11  ;;  %p3896_p0 = scmp.ne.s32.totalorder %s238_s15, %s3895_s16 }
  0x12   : > { %p3904_p4 = scmp.lt.s32.totalorder %s3895_s16, %s3895_s16 }
  0x13   : > { %p3886_p13 = pneg %p3685_p12 }
  0x14   : > { %p3905_p6 = por %p3904_p4, %p3903_p3 }
  0x15   : > { %p3898_p1 = pnand %p3896_p0, %p3886_p13 }
  0x17   : > { %p3899_p2 = pneg %p3898_p1 }
  0x19   : > { %p3906_p7 = pnand %p3905_p6, %p3899_p2 }
  0x1b   : > { %3909 = shalt.err (!%p3906_p7)
}
  0x1c   : > { %s3977_s17 = smov 64   ;;  %s3978_s18 = smov 4  }
  0x1d   : > { %3687 = dma.hbm_to_vmem [thread:$0]  (!%p3685_p12), %s4409_s4, 19456, %s238_s15, [#allocation3], %s3977_s17, %s3977_s17, %s3978_s18  }
  0x1e   : > { %286 = sbr.rel (%p4071_p10) target bundleno = 2429 (0x97d), region = 44 }
  0x23   : > { %3953 = dma.done.wait (%p3692_p9), [#allocation3], 19456  }
  0x24   : > { %3955 = vsyncadd (%p3692_p9), [#allocation3], 4294947840  ;;  %v3979_v0 = vmov 0.0   ;;  %vm3980_vm0 = vmmov 0   ;;  %v3732_v1 = vld [vmem:[#allocation2 + $0x38] sm:$0xff]   ;;  %v3733_v2 = vld [vmem:[#allocation2 + $0x30] sm:$0xff]  }
  0x25   : > { %3273 = vmatprep.subr.bf16.mxu0 %v3979_v0  ;;  %3289 = vmatprep.mubr.msk.bf16.mxu0 %vm3980_vm0, %v3979_v0  ;;  %v3734_v3 = vld [vmem:[#allocation2 + $0x28] sm:$0xff]   ;;  %v3735_v4 = vld [vmem:[#allocation2 + $0x20] sm:$0xff]   ;;  %p335_p6 = scmp.lt.s32.totalorder %s4043_s28, 3  ;;  %v3736_v5 = vld [vmem:[#allocation2 + $0x18] sm:$0xff]   ;;  %vm831_vm1 = vcmask 130048   ;;  %vm1100_vm2 = vcmask 1043456  }
  0x26   : > { %3293 = vmatprep.subr.bf16.mxu1 %v3979_v0  ;;  %3309 = vmatprep.mubr.msk.bf16.mxu1 %vm3980_vm0, %v3979_v0  ;;  %v3737_v6 = vld [vmem:[#allocation2 + $0x10] sm:$0xff]   ;;  %v3748_v7 = vld [vmem:[#allocation2 + $0x78] sm:$0xff]   ;;  %v3738_v9 = vld [vmem:[#allocation2 + $0x8] sm:$0xff]   ;;  %vm1096_vm3 = vcmask 64512   ;;  %s326_s20 = sand.u32 1, %s3966_s25   ;;  %s3086_s14 = sshll.u32 %s4043_s28, 4 }
  0x27   : > { %3274 = vmatpush3.bf16.msra.mxu0 %v3732_v1  ;;  %s4099_s21 = scalar_select %p335_p6, %s4043_s28, 3  ;;  %3294 = vmatpush3.bf16.msra.mxu1 %v3748_v7  ;;  %v3749_v8 = vld [vmem:[#allocation2 + $0x70] sm:$0xff]   ;;  %v3750_v10 = vld [vmem:[#allocation2 + $0x68] sm:$0xff]   ;;  %v3739_v11 = vld [vmem:[#allocation2] sm:$0xff]  }
  0x28   : > { %3275 = vmatprep.subr.bf16.mxu0 %v3979_v0  ;;  %3295 = vmatprep.subr.bf16.mxu1 %v3979_v0  ;;  %v3751_v14 = vld [vmem:[#allocation2 + $0x60] sm:$0xff]   ;;  %v3740_v15 = vld [vmem:[#allocation2 + $0xb8] sm:$0xff]   ;;  %v3741_v18 = vld [vmem:[#allocation2 + $0xb0] sm:$0xff]   ;;  %s2744_s18 = scalar_lea.sflag [#allocation4], %s326_s20  ;;  %s3981_s23 = smov [#allocation5]  }
  0x29   : > { %s3089_s22 = sshll.u32 %s4099_s21, 4  ;;  %s2900_s9 = sshll.u32 %s4099_s21, 3  ;;  %v3752_v17 = vld [vmem:[#allocation2 + $0x58] sm:$0xff]   ;;  %v3742_v19 = vld [vmem:[#allocation2 + $0xa8] sm:$0xff]   ;;  %v3743_v20 = vld [vmem:[#allocation2 + $0xa0] sm:$0xff]  }
  0x2a   : > { %s339_s8 = scalar_lea.vmem %s4405_s0, %s3089_s22  ;;  %v3744_v21 = vld [vmem:[#allocation2 + $0x98] sm:$0xff]   ;;  %v3745_v22 = vld [vmem:[#allocation2 + $0x90] sm:$0xff]   ;;  %v3746_v23 = vld [vmem:[#allocation2 + $0x88] sm:$0xff]   ;;  %s343_s15 = scalar_lea.vmem %s4406_s1, %s2900_s9 }
  0x2b   : > { %3276 = vmatpush3.bf16.msra.mxu0 %v3733_v2  ;;  %v359_v12 = vld [vmem:[%s339_s8] sm:$0xff]  ;;  %v360_v13 = vld [vmem:[%s339_s8 + $0x8] sm:$0xff]  ;;  %3296 = vmatpush3.bf16.msra.mxu1 %v3749_v8  ;;  %v3753_v27 = vld [vmem:[#allocation2 + $0x50] sm:$0xff]   ;;  %s347_s13 = scalar_lea.vmem %s4407_s2, %s2900_s9  ;;  %s352_s17 = scalar_lea.vmem %s4408_s3, %s3089_s22 }
  0x2c   : > { %3277 = vmatprep.subr.bf16.mxu0 %v3979_v0  ;;  %3297 = vmatprep.subr.bf16.mxu1 %v3979_v0  ;;  %v361_v16 = vpack.c.bf16 %v360_v13, %v359_v12  ;;  %v3747_v24 = vld [vmem:[#allocation2 + $0x80] sm:$0xff]   ;;  %v3754_v28 = vld [vmem:[#allocation2 + $0x48] sm:$0xff]   ;;  %v3756_v39 = vld [vmem:[#allocation2 + $0xf8] sm:$0xff]   ;;  %s327_s8 = scalar_lea.vmem [#allocation5], %s326_s20  ;;  %s2759_s22 = scalar_lea.hbm %s4411_s6, %s3086_s14 }
  0x2d   : > { %v593_v25 = vld [vmem:[%s343_s15] sm:$0xff]  ;;  %v3757_v41 = vld [vmem:[#allocation2 + $0xf0] sm:$0xff]   ;;  %v3758_v42 = vld [vmem:[#allocation2 + $0xe8] sm:$0xff]   ;;  %s2761_s15 = sshll.u32 %s327_s8, 4  ;;  %s3914_s29 = sshll.u32 %s3981_s23, 4  ;;  %s2762_s15 = int_to_ptr.vmem [resolvable:$true] %s2761_s15  ;;  %s3915_s29 = int_to_ptr.vmem [resolvable:$false] %s3914_s29 }
  0x2e   : > { %v594_v26 = vpack.c.bf16 %v593_v25, %v593_v25  ;;  %v3755_v29 = vld [vmem:[#allocation2 + $0x40] sm:$0xff]   ;;  %v3760_v44 = vld [vmem:[#allocation2 + $0xd8] sm:$0xff]   ;;  %v3761_v45 = vld [vmem:[#allocation2 + $0xd0] sm:$0xff]   ;;  %s3910_s19 = scalar_lea.vmem %s2762_s15, 16  ;;  %p3917_p11 = scmp.lt.s32.totalorder %s2762_s15, %s3915_s29 }
  0x2f   : > { %3278 = vmatpush3.bf16.msra.mxu0 %v3734_v3  ;;  %3298 = vmatpush3.bf16.msra.mxu1 %v3750_v10  ;;  %v2905_v30 = vld [vmem:[%s4410_s5] ss:$0 sm:$0xff]  ;;  %v2925_v46 = vld [vmem:[%s4410_s5 + $0x2] ss:$0 sm:$0xff]  ;;  %v3762_v48 = vld [vmem:[#allocation2 + $0xc8] sm:$0xff]   ;;  %p3911_p8 = scmp.ne.s32.totalorder %s2762_s15, %s3910_s19 }
  0x30   : > { %3279 = vmatprep.subr.bf16.mxu0 %v3979_v0  ;;  %3299 = vmatprep.subr.bf16.mxu1 %v3979_v0  ;;  %v3759_v43 = vld [vmem:[#allocation2 + $0xe0] sm:$0xff]   ;;  %v3772_v56 = vld [vmem:[#allocation2 + $0x138] sm:$0xff]   ;;  %v3773_v57 = vld [vmem:[#allocation2 + $0x130] sm:$0xff]  }
  0x31   : > { %v3763_v53 = vld [vmem:[#allocation2 + $0xc0] sm:$0xff]   ;;  %v3774_v58 = vld [vmem:[#allocation2 + $0x128] sm:$0xff]   ;;  %v3776_v60 = vld [vmem:[#allocation2 + $0x118] sm:$0xff]   ;;  %p3912_p9 = pnand %p3911_p8, %p4060_p5 }
  0x32   : > { %v3775_v59 = vld [vmem:[#allocation2 + $0x120] sm:$0xff]   ;;  %v3777_v61 = vld [vmem:[#allocation2 + $0x110] sm:$0xff]   ;;  %v3778_v62 = vld [vmem:[#allocation2 + $0x108] sm:$0xff]  }
  0x33   : > { %3280 = vmatpush3.bf16.msra.mxu0 %v3735_v4  ;;  %3300 = vmatpush3.bf16.msra.mxu1 %v3751_v14  ;;  %v3779_v63 = vld [vmem:[#allocation2 + $0x100] sm:$0xff]   ;;  %v3764_v13 = vld [vmem:[#allocation2 + $0x178] sm:$0xff]   ;;  %v3765_v14 = vld [vmem:[#allocation2 + $0x170] sm:$0xff]   ;;  %p3913_p10 = pneg %p3912_p9 }
  0x34   : > { %3281 = vmatprep.subr.bf16.mxu0 %v3979_v0  ;;  %3301 = vmatprep.subr.bf16.mxu1 %v3979_v0  ;;  %v2915_v1 = vld [vmem:[%s4410_s5 + $0x1] ss:$0 sm:$0xff] }
  0x35   : > { %v824_v8 = vld [vmem:[%s347_s13] sm:$0xff]  ;;  %s3916_s13 = scalar_lea.vmem %s3915_s29, 32 }
  0x36   : > { %v4174_v12 = vpack.c.bf16 %v824_v8, %v824_v8  ;;  %p3918_p12 = scmp.lt.s32.totalorder %s3916_s13, %s3910_s19 }
  0x37   : > { %3282 = vmatpush3.bf16.msra.mxu0 %v3736_v5  ;;  %3302 = vmatpush3.bf16.msra.mxu1 %v3752_v17  ;;  %v3768_v17 = vld [vmem:[#allocation2 + $0x158] sm:$0xff]  }
  0x38   : > { %3283 = vmatprep.subr.bf16.mxu0 %v3979_v0  ;;  %3303 = vmatprep.subr.bf16.mxu1 %v3979_v0  ;;  %p3919_p13 = por %p3918_p12, %p3917_p11 }
  0x3a   : > { %p3920_p0 = pnand %p3919_p13, %p3913_p10 }
  0x3b   : > { %3284 = vmatpush3.bf16.msra.mxu0 %v3737_v6  ;;  %3304 = vmatpush3.bf16.msra.mxu1 %v3753_v27  ;;  %v3771_v27 = vld [vmem:[#allocation2 + $0x140] sm:$0xff]  }
  0x3c   : > { %3285 = vmatprep.subr.bf16.mxu0 %v3979_v0  ;;  %3305 = vmatprep.subr.bf16.mxu1 %v3979_v0 }
  0x3f   : > { %3286 = vmatpush3.bf16.msra.mxu0 %v3738_v9  ;;  %3306 = vmatpush3.bf16.msra.mxu1 %v3754_v28 }
  0x40   : > { %3287 = vmatprep.subr.bf16.mxu0 %v3979_v0  ;;  %3307 = vmatprep.subr.bf16.mxu1 %v3979_v0 }
  0x43   : > { %3288 = vmatpush3.bf16.msra.mxu0 %v3739_v11  ;;  %3308 = vmatpush3.bf16.msra.mxu1 %v3755_v29 }
  0x44   : > { %3313 = vmatprep.subr.bf16.mxu0 %v3979_v0  ;;  %3333 = vmatprep.subr.bf16.mxu1 %v3979_v0 }
  0x46   : > { %3290 = vmatmul.mubr.bf16.vlgmr.msra.gmra.mxu0 %v361_v16  ;;  %v3767_v16 = vld [vmem:[#allocation2 + $0x160] sm:$0xff]  }
  0x47   : > { %3314 = vmatpush3.bf16.msra.mxu0 %v3740_v15  ;;  %3329 = vmatprep.mubr.msk.bf16.mxu0 %vm3980_vm0, %v3979_v0  ;;  %v3766_v15 = vld [vmem:[#allocation2 + $0x168] sm:$0xff]  }
  0x48   : > { %3315 = vmatprep.subr.bf16.mxu0 %v3979_v0 }
  0x4b   : > { %3316 = vmatpush3.bf16.msra.mxu0 %v3741_v18  ;;  %v2935_v18 = vld [vmem:[%s4410_s5 + $0x3] ss:$0 sm:$0xff] }
  0x4c   : > { %3317 = vmatprep.subr.bf16.mxu0 %v3979_v0 }
  0x4f   : > { %3318 = vmatpush3.bf16.msra.mxu0 %v3742_v19  ;;  %v3769_v19 = vld [vmem:[#allocation2 + $0x150] sm:$0xff]  }
  0x50   : > { %3319 = vmatprep.subr.bf16.mxu0 %v3979_v0 }
  0x53   : > { %3320 = vmatpush3.bf16.msra.mxu0 %v3743_v20 }
  0x54   : > { %3321 = vmatprep.subr.bf16.mxu0 %v3979_v0 }
  0x57   : > { %3322 = vmatpush3.bf16.msra.mxu0 %v3744_v21 }
  0x58   : > { %3323 = vmatprep.subr.bf16.mxu0 %v3979_v0 }
  0x5b   : > { %3324 = vmatpush3.bf16.msra.mxu0 %v3745_v22 }
  0x5c   : > { %3325 = vmatprep.subr.bf16.mxu0 %v3979_v0 }
  0x5f   : > { %3326 = vmatpush3.bf16.msra.mxu0 %v3746_v23  ;;  %v3770_v23 = vld [vmem:[#allocation2 + $0x148] sm:$0xff]  }
  0x60   : > { %3327 = vmatprep.subr.bf16.mxu0 %v3979_v0 }
  0x63   : > { %3328 = vmatpush3.bf16.msra.mxu0 %v3747_v24 }
  0x64   : > { %3379 = vmatprep.subr.bf16.mxu0 %v3979_v0 }
  0x66   : > { %3330 = vmatmul.mubr.bf16.vlgmr.msra.gmra.mxu0 %v594_v26 }
  0x67   : > { %3395 = vmatprep.mubr.msk.bf16.mxu0 %vm3980_vm0, %v3979_v0  ;;  %3380 = vmatpush3.bf16.msra.mxu0 %v3772_v56 }
  0x68   : > { %3381 = vmatprep.subr.bf16.mxu0 %v3979_v0 }
  0x6b   : > { %3382 = vmatpush3.bf16.msra.mxu0 %v3773_v57 }
  0x6c   : > { %3383 = vmatprep.subr.bf16.mxu0 %v3979_v0 }
  0x6f   : > { %3384 = vmatpush3.bf16.msra.mxu0 %v3774_v58 }
  0x70   : > { %3385 = vmatprep.subr.bf16.mxu0 %v3979_v0 }
  0x73   : > { %3386 = vmatpush3.bf16.msra.mxu0 %v3775_v59 }
  0x74   : > { %3387 = vmatprep.subr.bf16.mxu0 %v3979_v0 }
  0x77   : > { %3388 = vmatpush3.bf16.msra.mxu0 %v3776_v60 }
  0x78   : > { %3389 = vmatprep.subr.bf16.mxu0 %v3979_v0 }
  0x7b   : > { %3390 = vmatpush3.bf16.msra.mxu0 %v3777_v61 }
  0x7c   : > { %3391 = vmatprep.subr.bf16.mxu0 %v3979_v0 }
  0x7f   : > { %3392 = vmatpush3.bf16.msra.mxu0 %v3778_v62 }
  0x80   : > { %3393 = vmatprep.subr.bf16.mxu0 %v3979_v0 }
  0x83   : > { %3394 = vmatpush3.bf16.msra.mxu0 %v3779_v63  ;;  %v3804_v63 = vld [vmem:[#allocation2 + $0x238] sm:$0xff]  }
  0x84   : > { %3405 = vmatprep.subr.bf16.mxu0 %v3979_v0 }
 0x106   : > { %v467_v31 = vpop.f32.mrf.mxu0 }
 0x107   : > { %v468_v33 = vadd.f32 %v2905_v30, %v467_v31  ;;  %v827_v31 = vld [vmem:[%s352_s17 + $0x8] sm:$0xff] }
 0x108   : > { %v3291_v32 = vpop.f32.mrf.mxu0 }
 0x109   : > { %v474_v37 = vmax.f32 %v468_v33, 0.0  ;;  %v3784_v33 = vld [vmem:[#allocation2 + $0x1b8] sm:$0xff]  }
 0x10a   : > { %v470_v34 = vpop.f32.mrf.mxu0 }
 0x10b   : > { %v471_v35 = vadd.f32 %v2905_v30, %v470_v34  ;;  %v826_v30 = vld [vmem:[%s352_s17] sm:$0xff]  ;;  %v3786_v34 = vld [vmem:[#allocation2 + $0x1b0] sm:$0xff]  }
 0x10c   : > { %v3292_v36 = vpop.f32.mrf.mxu0  ;;  %v4202_v32 = vpack.c.bf16 %v827_v31, %v826_v30  ;;  %v3797_v30 = vld [vmem:[#allocation2 + $0x270] sm:$0xff]   ;;  %v3798_v31 = vld [vmem:[#allocation2 + $0x268] sm:$0xff]  }
 0x10d   : > { %v475_v38 = vmax.f32 %v471_v35, 0.0  ;;  %v3788_v35 = vld [vmem:[#allocation2 + $0x1a8] sm:$0xff]   ;;  %v3790_v36 = vld [vmem:[#allocation2 + $0x1a0] sm:$0xff]  }
 0x10f   : > { %v476_v40 = vpack.c.bf16 %v475_v38, %v474_v37  ;;  %v3792_v37 = vld [vmem:[#allocation2 + $0x198] sm:$0xff]   ;;  %v3793_v38 = vld [vmem:[#allocation2 + $0x190] sm:$0xff]  }
 0x111   : > { %3310 = vmatmul.mubr.bf16.vlgmr.msra.gmra.mxu1 %v476_v40  ;;  %v3795_v40 = vld [vmem:[#allocation2 + $0x180] sm:$0xff]  }
 0x112   : > { %3334 = vmatpush3.bf16.msra.mxu1 %v3756_v39  ;;  %3349 = vmatprep.mubr.msk.bf16.mxu1 %vm3980_vm0, %v3979_v0  ;;  %v3794_v39 = vld [vmem:[#allocation2 + $0x188] sm:$0xff]  }
 0x113   : > { %3335 = vmatprep.subr.bf16.mxu1 %v3979_v0 }
 0x116   : > { %3336 = vmatpush3.bf16.msra.mxu1 %v3757_v41 }
 0x117   : > { %3337 = vmatprep.subr.bf16.mxu1 %v3979_v0 }
 0x11a   : > { %3338 = vmatpush3.bf16.msra.mxu1 %v3758_v42  ;;  %v3780_v42 = vld [vmem:[#allocation2 + $0x1f8] sm:$0xff]  }
 0x11b   : > { %3339 = vmatprep.subr.bf16.mxu1 %v3979_v0 }
 0x11e   : > { %3340 = vmatpush3.bf16.msra.mxu1 %v3759_v43 }
 0x11f   : > { %3341 = vmatprep.subr.bf16.mxu1 %v3979_v0 }
 0x122   : > { %3342 = vmatpush3.bf16.msra.mxu1 %v3760_v44 }
 0x123   : > { %3343 = vmatprep.subr.bf16.mxu1 %v3979_v0 }
 0x126   : > { %3344 = vmatpush3.bf16.msra.mxu1 %v3761_v45  ;;  %v702_v47 = vpop.f32.mrf.mxu0 }
 0x127   : > { %3345 = vmatprep.subr.bf16.mxu1 %v3979_v0  ;;  %v703_v49 = vadd.f32 %v2925_v46, %v702_v47  ;;  %v3781_v46 = vld [vmem:[#allocation2 + $0x1f0] sm:$0xff]  }
 0x128   : > { %v3331_v50 = vpop.f32.mrf.mxu0 }
 0x129   : > { %v708_v51 = vmax.f32 %v703_v49, 0.0  ;;  %v3783_v49 = vld [vmem:[#allocation2 + $0x1e0] sm:$0xff]   ;;  %v3785_v50 = vld [vmem:[#allocation2 + $0x1d8] sm:$0xff]  }
 0x12a   : > { %3346 = vmatpush3.bf16.msra.mxu1 %v3762_v48  ;;  %v705_v52 = vpop.f32.mrf.mxu0  ;;  %v3782_v48 = vld [vmem:[#allocation2 + $0x1e8] sm:$0xff]  }
 0x12b   : > { %3347 = vmatprep.subr.bf16.mxu1 %v3979_v0  ;;  %v709_v55 = vpack.c.bf16 %v708_v51, %v708_v51  ;;  %v3787_v51 = vld [vmem:[#allocation2 + $0x1d0] sm:$0xff]   ;;  %v3789_v52 = vld [vmem:[#allocation2 + $0x1c8] sm:$0xff]  }
 0x12c   : > { %v3332_v54 = vpop.f32.mrf.mxu0 }
 0x12e   : > { %3348 = vmatpush3.bf16.msra.mxu1 %v3763_v53  ;;  %v3791_v53 = vld [vmem:[#allocation2 + $0x1c0] sm:$0xff]  }
 0x12f   : > { %3353 = vmatprep.subr.bf16.mxu1 %v3979_v0 }
 0x131   : > { %3350 = vmatmul.mubr.bf16.vlgmr.msra.gmra.mxu1 %v709_v55 }
 0x132   : > { %3355 = vmatprep.mubr.msk.bf16.mxu1 %vm3980_vm0, %v3979_v0 }
 0x1d1   : > { %v584_v2 = vpop.f32.mrf.mxu1 }
 0x1d2   : > { %v585_v4 = vadd.f32 %v2915_v1, %v584_v2  ;;  %v3806_v2 = vld [vmem:[#allocation2 + $0x228] sm:$0xff]  }
 0x1d3   : > { %v3311_v3 = vpop.f32.mrf.mxu1 }
 0x1d4   : > { %v591_v9 = vmax.f32 %v585_v4, 0.0  ;;  %v3807_v3 = vld [vmem:[#allocation2 + $0x220] sm:$0xff]   ;;  %v3808_v4 = vld [vmem:[#allocation2 + $0x218] sm:$0xff]  }
 0x1d5   : > { %v587_v5 = vpop.f32.mrf.mxu1 }
 0x1d6   : > { %v588_v6 = vadd.f32 %v2915_v1, %v587_v5  ;;  %v3805_v1 = vld [vmem:[#allocation2 + $0x230] sm:$0xff]  }
 0x1d7   : > { %v3312_v7 = vpop.f32.mrf.mxu1  ;;  %v3809_v5 = vld [vmem:[#allocation2 + $0x210] sm:$0xff]  }
 0x1d8   : > { %v592_v10 = vmax.f32 %v588_v6, 0.0  ;;  %v3810_v6 = vld [vmem:[#allocation2 + $0x208] sm:$0xff]   ;;  %v3811_v7 = vld [vmem:[#allocation2 + $0x200] sm:$0xff]  }
 0x1da   : > { %v4172_v11 = vpack.c.bf16 %v592_v10, %v591_v9 }
 0x1dc   : > { %3354 = vmatpush3.bf16.msra.mxu1 %v4172_v11 }
 0x1dd   : > { %3359 = vmatprep.subr.bf16.mxu1 %v3979_v0 }
 0x1df   : > { %3356 = vmatmul.mubr.msk.bf16.vlgmr.msra.gmra.mxu1 %vm831_vm1, %v4174_v12 }
 0x1e0   : > { %3360 = vmatpush3.bf16.msra.mxu1 %v3764_v13  ;;  %3375 = vmatprep.mubr.msk.bf16.mxu1 %vm3980_vm0, %v3979_v0 }
 0x1e1   : > { %3361 = vmatprep.subr.bf16.mxu1 %v3979_v0 }
 0x1e4   : > { %3362 = vmatpush3.bf16.msra.mxu1 %v3765_v14 }
 0x1e5   : > { %3363 = vmatprep.subr.bf16.mxu1 %v3979_v0 }
 0x1e8   : > { %3364 = vmatpush3.bf16.msra.mxu1 %v3766_v15 }
 0x1e9   : > { %3365 = vmatprep.subr.bf16.mxu1 %v3979_v0 }
 0x1ec   : > { %3366 = vmatpush3.bf16.msra.mxu1 %v3767_v16 }
 0x1ed   : > { %3367 = vmatprep.subr.bf16.mxu1 %v3979_v0 }
 0x1f0   : > { %3368 = vmatpush3.bf16.msra.mxu1 %v3768_v17 }
 0x1f1   : > { %v817_v20 = vpop.f32.mrf.mxu1  ;;  %3369 = vmatprep.subr.bf16.mxu1 %v3979_v0 }
 0x1f2   : > { %v818_v21 = vadd.f32 %v2935_v18, %v817_v20 }
 0x1f3   : > { %v3351_v22 = vpop.f32.mrf.mxu1 }
 0x1f4   : > { %3370 = vmatpush3.bf16.msra.mxu1 %v3769_v19  ;;  %v823_v24 = vmax.f32 %v818_v21, 0.0  ;;  %v2981_v19 = vld [vmem:[%s4410_s5 + $0x5] ss:$0 sm:$0xff] }
 0x1f5   : > { %v820_v25 = vpop.f32.mrf.mxu1  ;;  %3371 = vmatprep.subr.bf16.mxu1 %v3979_v0 }
 0x1f6   : > { %v830_v28 = vpack.c.bf16 %v823_v24, %v823_v24 }
 0x1f7   : > { %v3352_v26 = vpop.f32.mrf.mxu1 }
 0x1f8   : > { %3372 = vmatpush3.bf16.msra.mxu1 %v3770_v23  ;;  %v1102_v29 = vsel %vm1100_vm2, %v830_v28, 0 }
 0x1f9   : > { %3373 = vmatprep.subr.bf16.mxu1 %v3979_v0 }
 0x1fc   : > { %3374 = vmatpush3.bf16.msra.mxu1 %v3771_v27 }
 0x1fd   : > { %3399 = vmatprep.subr.bf16.mxu1 %v3979_v0 }
 0x1ff   : > { %3376 = vmatmul.mubr.bf16.vlgmr.msra.gmra.mxu1 %v830_v28 }
 0x200   : > { %3400 = vmatpush3.bf16.msra.mxu1 %v1102_v29  ;;  %3401 = vmatprep.mubr.msk.bf16.mxu1 %vm3980_vm0, %v3979_v0  ;;  %v3796_v29 = vld [vmem:[#allocation2 + $0x278] sm:$0xff]  }
 0x201   : > { %3425 = vmatprep.subr.bf16.mxu1 %v3979_v0 }
 0x207   : > { %3402 = vmatmul.mubr.msk.bf16.vlgmr.msra.gmra.mxu1 %vm1096_vm3, %v4202_v32 }
 0x208   : > { %3441 = vmatprep.mubr.msk.bf16.mxu1 %vm3980_vm0, %v3979_v0  ;;  %3426 = vmatpush3.bf16.msra.mxu1 %v3784_v33  ;;  %v3799_v33 = vld [vmem:[#allocation2 + $0x260] sm:$0xff]  }
 0x209   : > { %3427 = vmatprep.subr.bf16.mxu1 %v3979_v0 }
 0x20c   : > { %3428 = vmatpush3.bf16.msra.mxu1 %v3786_v34  ;;  %v3800_v34 = vld [vmem:[#allocation2 + $0x258] sm:$0xff]  }
 0x20d   : > { %3429 = vmatprep.subr.bf16.mxu1 %v3979_v0 }
 0x210   : > { %3430 = vmatpush3.bf16.msra.mxu1 %v3788_v35  ;;  %v2962_v35 = vld [vmem:[%s4410_s5 + $0x4] ss:$0 sm:$0xff] }
 0x211   : > { %3431 = vmatprep.subr.bf16.mxu1 %v3979_v0 }
 0x214   : > { %3432 = vmatpush3.bf16.msra.mxu1 %v3790_v36  ;;  %v3801_v36 = vld [vmem:[#allocation2 + $0x250] sm:$0xff]  }
 0x215   : > { %3433 = vmatprep.subr.bf16.mxu1 %v3979_v0 }
 0x218   : > { %3434 = vmatpush3.bf16.msra.mxu1 %v3792_v37 }
 0x219   : > { %3435 = vmatprep.subr.bf16.mxu1 %v3979_v0 }
 0x21c   : > { %3436 = vmatpush3.bf16.msra.mxu1 %v3793_v38  ;;  %v3802_v38 = vld [vmem:[#allocation2 + $0x248] sm:$0xff]  }
 0x21d   : > { %3437 = vmatprep.subr.bf16.mxu1 %v3979_v0 }
 0x220   : > { %3438 = vmatpush3.bf16.msra.mxu1 %v3794_v39 }
 0x221   : > { %3439 = vmatprep.subr.bf16.mxu1 %v3979_v0 }
 0x224   : > { %3440 = vmatpush3.bf16.msra.mxu1 %v3795_v40  ;;  %v3803_v40 = vld [vmem:[#allocation2 + $0x240] sm:$0xff]  }
 0x225   : > { %3445 = vmatprep.subr.bf16.mxu1 %v3979_v0 }
 0x29f   : > { %v869_v41 = vpop.f32.mrf.mxu1 }
 0x2a0   : > { %v875_v43 = vpack.c.bf16 %v869_v41, %v869_v41 }
 0x2a1   : > { %v3357_v44 = vpop.f32.mrf.mxu1 }
 0x2a2   : > { %3396 = vmatmul.mubr.bf16.vlgmr.msra.gmra.mxu0 %v875_v43  ;;  %v3816_v43 = vld [vmem:[#allocation2 + $0x2b8] sm:$0xff]   ;;  %v3818_v44 = vld [vmem:[#allocation2 + $0x2b0] sm:$0xff]  }
 0x2a3   : > { %3406 = vmatpush3.bf16.msra.mxu0 %v3780_v42  ;;  %v872_v45 = vpop.f32.mrf.mxu1  ;;  %3421 = vmatprep.mubr.msk.bf16.mxu0 %vm3980_vm0, %v3979_v0 }
 0x2a4   : > { %3407 = vmatprep.subr.bf16.mxu0 %v3979_v0  ;;  %v3820_v45 = vld [vmem:[#allocation2 + $0x2a8] sm:$0xff]  }
 0x2a5   : > { %v3358_v47 = vpop.f32.mrf.mxu1 }
 0x2a6   : > { %v3825_v47 = vld [vmem:[#allocation2 + $0x290] sm:$0xff]  }
 0x2a7   : > { %3408 = vmatpush3.bf16.msra.mxu0 %v3781_v46  ;;  %v3822_v46 = vld [vmem:[#allocation2 + $0x2a0] sm:$0xff]  }
 0x2a8   : > { %3409 = vmatprep.subr.bf16.mxu0 %v3979_v0 }
 0x2ab   : > { %3410 = vmatpush3.bf16.msra.mxu0 %v3782_v48  ;;  %v3826_v48 = vld [vmem:[#allocation2 + $0x288] sm:$0xff]  }
 0x2ac   : > { %3411 = vmatprep.subr.bf16.mxu0 %v3979_v0 }
 0x2af   : > { %3412 = vmatpush3.bf16.msra.mxu0 %v3783_v49  ;;  %v3827_v49 = vld [vmem:[#allocation2 + $0x280] sm:$0xff]  }
 0x2b0   : > { %3413 = vmatprep.subr.bf16.mxu0 %v3979_v0 }
 0x2b3   : > { %3414 = vmatpush3.bf16.msra.mxu0 %v3785_v50 }
 0x2b4   : > { %3415 = vmatprep.subr.bf16.mxu0 %v3979_v0 }
 0x2b7   : > { %3416 = vmatpush3.bf16.msra.mxu0 %v3787_v51  ;;  %v3812_v51 = vld [vmem:[#allocation2 + $0x2f8] sm:$0xff]  }
 0x2b8   : > { %3417 = vmatprep.subr.bf16.mxu0 %v3979_v0 }
 0x2bb   : > { %3418 = vmatpush3.bf16.msra.mxu0 %v3789_v52 }
 0x2bc   : > { %3419 = vmatprep.subr.bf16.mxu0 %v3979_v0 }
 0x2bf   : > { %3420 = vmatpush3.bf16.msra.mxu0 %v3791_v53  ;;  %v4225_v54 = vpop.f32.mrf.mxu1 }
 0x2c0   : > { %3471 = vmatprep.subr.bf16.mxu0 %v3979_v0 }
 0x2c1   : > { %v3377_v55 = vpop.f32.mrf.mxu1 }
 0x2c2   : > { %3422 = vmatmul.mubr.bf16.vlgmr.msra.gmra.mxu0 %v4172_v11  ;;  %v3813_v55 = vld [vmem:[#allocation2 + $0x2f0] sm:$0xff]  }
 0x2c3   : > { %v995_v56 = vpop.f32.mrf.mxu1  ;;  %3487 = vmatprep.mubr.msk.bf16.mxu0 %vm3980_vm0, %v3979_v0  ;;  %3472 = vmatpush3.bf16.msra.mxu0 %v3804_v63 }
 0x2c4   : > { %3473 = vmatprep.subr.bf16.mxu0 %v3979_v0 }
 0x2c5   : > { %v3378_v57 = vpop.f32.mrf.mxu1 }
 0x2c6   : > { %v3814_v57 = vld [vmem:[#allocation2 + $0x2e8] sm:$0xff]  }
 0x2c7   : > { %v1138_v58 = vpop.f32.mrf.mxu1  ;;  %3474 = vmatpush3.bf16.msra.mxu0 %v3805_v1 }
 0x2c8   : > { %3475 = vmatprep.subr.bf16.mxu0 %v3979_v0 }
 0x2c9   : > { %v3403_v59 = vpop.f32.mrf.mxu1 }
 0x2ca   : > { %v3817_v59 = vld [vmem:[#allocation2 + $0x2d8] sm:$0xff]  }
 0x2cb   : > { %v1141_v60 = vpop.f32.mrf.mxu1  ;;  %3476 = vmatpush3.bf16.msra.mxu0 %v3806_v2 }
 0x2cc   : > { %v1145_v61 = vpack.c.bf16 %v1141_v60, %v1138_v58  ;;  %3477 = vmatprep.subr.bf16.mxu0 %v3979_v0  ;;  %v3815_v58 = vld [vmem:[#allocation2 + $0x2e0] sm:$0xff]   ;;  %v3819_v60 = vld [vmem:[#allocation2 + $0x2d0] sm:$0xff]  }
 0x2cd   : > { %v3404_v62 = vpop.f32.mrf.mxu1 }
 0x2ce   : > { %3442 = vmatmul.mubr.bf16.vlgmr.msra.gmra.mxu1 %v1145_v61  ;;  %v3821_v61 = vld [vmem:[#allocation2 + $0x2c8] sm:$0xff]   ;;  %v3823_v62 = vld [vmem:[#allocation2 + $0x2c0] sm:$0xff]  }
 0x2cf   : > { %3447 = vmatprep.mubr.msk.bf16.mxu1 %vm3980_vm0, %v3979_v0  ;;  %3478 = vmatpush3.bf16.msra.mxu0 %v3807_v3 }
 0x2d0   : > { %3479 = vmatprep.subr.bf16.mxu0 %v3979_v0 }
 0x2d3   : > { %3480 = vmatpush3.bf16.msra.mxu0 %v3808_v4 }
 0x2d4   : > { %3481 = vmatprep.subr.bf16.mxu0 %v3979_v0 }
 0x2d7   : > { %3482 = vmatpush3.bf16.msra.mxu0 %v3809_v5 }
 0x2d8   : > { %3483 = vmatprep.subr.bf16.mxu0 %v3979_v0 }
 0x2db   : > { %3484 = vmatpush3.bf16.msra.mxu0 %v3810_v6 }
 0x2dc   : > { %3485 = vmatprep.subr.bf16.mxu0 %v3979_v0 }
 0x2df   : > { %3486 = vmatpush3.bf16.msra.mxu0 %v3811_v7 }
 0x2e0   : > { %3497 = vmatprep.subr.bf16.mxu0 %v3979_v0 }
 0x362   : > { %v1080_v8 = vpop.f32.mrf.mxu0 }
 0x364   : > { %v3397_v9 = vpop.f32.mrf.mxu0 }
 0x365   : > { %v3828_v9 = vld [vmem:[#allocation2 + $0x338] sm:$0xff]  }
 0x366   : > { %v1083_v10 = vpop.f32.mrf.mxu0 }
 0x367   : > { %v3829_v10 = vld [vmem:[#allocation2 + $0x330] sm:$0xff]  }
 0x368   : > { %v3398_v11 = vpop.f32.mrf.mxu0 }
 0x369   : > { %v3830_v11 = vld [vmem:[#allocation2 + $0x328] sm:$0xff]  }
 0x382   : > { %v1262_v13 = vpop.f32.mrf.mxu0 }
 0x384   : > { %v3423_v14 = vpop.f32.mrf.mxu0 }
 0x385   : > { %v3832_v14 = vld [vmem:[#allocation2 + $0x318] sm:$0xff]  }
 0x386   : > { %v1265_v15 = vpop.f32.mrf.mxu0 }
 0x388   : > { %v3424_v16 = vpop.f32.mrf.mxu0 }
 0x389   : > { %v3834_v16 = vld [vmem:[#allocation2 + $0x308] sm:$0xff]  }
 0x38e   : > { %v1351_v17 = vpop.f32.mrf.mxu1 }
 0x38f   : > { %v1352_v18 = vadd.f32 %v1351_v17, %v1262_v13  ;;  %v3831_v13 = vld [vmem:[#allocation2 + $0x320] sm:$0xff]  }
 0x390   : > { %v3443_v20 = vpop.f32.mrf.mxu1  ;;  %v3835_v17 = vld [vmem:[#allocation2 + $0x300] sm:$0xff]  }
 0x391   : > { %v1366_v22 = vadd.f32 %v2981_v19, %v1352_v18  ;;  %v3836_v18 = vld [vmem:[#allocation2 + $0x378] sm:$0xff]   ;;  %v3838_v20 = vld [vmem:[#allocation2 + $0x368] sm:$0xff]  }
 0x392   : > { %v1354_v21 = vpop.f32.mrf.mxu1 }
 0x393   : > { %v1355_v23 = vadd.f32 %v1354_v21, %v1265_v15  ;;  %v1368_v26 = vmax.f32 %v1366_v22, 0.0  ;;  %v3833_v15 = vld [vmem:[#allocation2 + $0x310] sm:$0xff]   ;;  %v3839_v21 = vld [vmem:[#allocation2 + $0x360] sm:$0xff]   ;;  %v3840_v22 = vld [vmem:[#allocation2 + $0x358] sm:$0xff]  }
 0x394   : > { %v3444_v24 = vpop.f32.mrf.mxu1 }
 0x395   : > { %v1367_v25 = vadd.f32 %v2981_v19, %v1355_v23  ;;  %v3837_v19 = vld [vmem:[#allocation2 + $0x370] sm:$0xff]  }
 0x396   : > { %v3841_v23 = vld [vmem:[#allocation2 + $0x350] sm:$0xff]  }
 0x397   : > { %v1369_v27 = vmax.f32 %v1367_v25, 0.0 }
 0x399   : > { %v4244_v28 = vpack.c.bf16 %v1369_v27, %v1368_v26 }
 0x39b   : > { %3446 = vmatpush3.bf16.msra.mxu1 %v4244_v28 }
 0x39c   : > { %3451 = vmatprep.subr.bf16.mxu1 %v3979_v0 }
 0x39e   : > { %3448 = vmatmul.mubr.msk.bf16.vlgmr.msra.gmra.mxu1 %vm831_vm1, %v4174_v12  ;;  %v1081_v12 = vadd.f32 %v1080_v8, %v4225_v54 }
 0x39f   : > { %3452 = vmatpush3.bf16.msra.mxu1 %v3796_v29  ;;  %3467 = vmatprep.mubr.msk.bf16.mxu1 %vm3980_vm0, %v3979_v0 }
 0x3a0   : > { %3453 = vmatprep.subr.bf16.mxu1 %v3979_v0  ;;  %v1094_v37 = vadd.f32 %v2962_v35, %v1081_v12 }
 0x3a2   : > { %v1095_v39 = vmax.f32 %v1094_v37, 0.0 }
 0x3a3   : > { %3454 = vmatpush3.bf16.msra.mxu1 %v3797_v30 }
 0x3a4   : > { %3455 = vmatprep.subr.bf16.mxu1 %v3979_v0  ;;  %v1371_v41 = vpack.c.bf16 %v1095_v39, %v1095_v39 }
 0x3a6   : > { %v1634_v42 = vsel %vm1100_vm2, %v1371_v41, 0 }
 0x3a7   : > { %3456 = vmatpush3.bf16.msra.mxu1 %v3798_v31 }
 0x3a8   : > { %3457 = vmatprep.subr.bf16.mxu1 %v3979_v0 }
 0x3ab   : > { %3458 = vmatpush3.bf16.msra.mxu1 %v3799_v33  ;;  %v1902_v33 = vlaneseq }
 0x3ac   : > { %3459 = vmatprep.subr.bf16.mxu1 %v3979_v0 }
 0x3ad   : > { %v1903_v37 = vshrl.u32 %v1902_v33, 7 }
 0x3af   : > { %3460 = vmatpush3.bf16.msra.mxu1 %v3800_v34 }
 0x3b0   : > { %3461 = vmatprep.subr.bf16.mxu1 %v3979_v0 }
 0x3b3   : > { %3462 = vmatpush3.bf16.msra.mxu1 %v3801_v36  ;;  %v3000_v36 = vld [vmem:[%s4410_s5 + $0x6] ss:$0 sm:$0xff] }
 0x3b4   : > { %3463 = vmatprep.subr.bf16.mxu1 %v3979_v0 }
 0x3b7   : > { %3464 = vmatpush3.bf16.msra.mxu1 %v3802_v38  ;;  %v3019_v38 = vld [vmem:[%s4410_s5 + $0x7] ss:$0 sm:$0xff] }
 0x3b8   : > { %3465 = vmatprep.subr.bf16.mxu1 %v3979_v0 }
 0x3bb   : > { %3466 = vmatpush3.bf16.msra.mxu1 %v3803_v40 }
 0x3bc   : > { %3491 = vmatprep.subr.bf16.mxu1 %v3979_v0 }
 0x3be   : > { %3468 = vmatmul.mubr.bf16.vlgmr.msra.gmra.mxu1 %v1371_v41  ;;  %v1904_v41 = vadd.s32 8, %v1903_v37 }
 0x3bf   : > { %3492 = vmatpush3.bf16.msra.mxu1 %v1634_v42  ;;  %3493 = vmatprep.mubr.msk.bf16.mxu1 %vm3980_vm0, %v3979_v0 }
 0x3c0   : > { %3517 = vmatprep.subr.bf16.mxu1 %v3979_v0  ;;  %vm1907_vm4 = vcmp.lt.s32.totalorder %v1904_v41, 12  ;;  %v3866_v41 = vld [vmem:[#allocation2 + $0x408] sm:$0xff]  }
 0x3c6   : > { %3494 = vmatmul.mubr.msk.bf16.vlgmr.msra.gmra.mxu1 %vm1096_vm3, %v4202_v32  ;;  %v3824_v32 = vld [vmem:[#allocation2 + $0x298] sm:$0xff]  }
 0x3c7   : > { %3533 = vmatprep.mubr.msk.bf16.mxu1 %vm3980_vm0, %v3979_v0  ;;  %3518 = vmatpush3.bf16.msra.mxu1 %v3816_v43 }
 0x3c8   : > { %3519 = vmatprep.subr.bf16.mxu1 %v3979_v0 }
 0x3cb   : > { %3520 = vmatpush3.bf16.msra.mxu1 %v3818_v44 }
 0x3cc   : > { %3521 = vmatprep.subr.bf16.mxu1 %v3979_v0 }
 0x3cf   : > { %3522 = vmatpush3.bf16.msra.mxu1 %v3820_v45  ;;  %v1905_v45 = vadd.s32 16, %v1903_v37  ;;  %v3857_v37 = vld [vmem:[#allocation2 + $0x390] sm:$0xff]  }
 0x3d0   : > { %3523 = vmatprep.subr.bf16.mxu1 %v3979_v0 }
 0x3d1   : > { %vm1914_vm5 = vcmp.lt.s32.totalorder %v1905_v45, 22 }
 0x3d3   : > { %3524 = vmatpush3.bf16.msra.mxu1 %v3822_v46 }
 0x3d4   : > { %3525 = vmatprep.subr.bf16.mxu1 %v3979_v0 }
 0x3d7   : > { %3526 = vmatpush3.bf16.msra.mxu1 %v3824_v32 }
 0x3d8   : > { %3527 = vmatprep.subr.bf16.mxu1 %v3979_v0 }
 0x3db   : > { %3528 = vmatpush3.bf16.msra.mxu1 %v3825_v47 }
 0x3dc   : > { %3529 = vmatprep.subr.bf16.mxu1 %v3979_v0 }
 0x3df   : > { %3530 = vmatpush3.bf16.msra.mxu1 %v3826_v48 }
 0x3e0   : > { %3531 = vmatprep.subr.bf16.mxu1 %v3979_v0 }
 0x3e3   : > { %3532 = vmatpush3.bf16.msra.mxu1 %v3827_v49 }
 0x3e4   : > { %3557 = vmatprep.subr.bf16.mxu1 %v3979_v0 }
 0x45e   : > { %v1406_v50 = vpop.f32.mrf.mxu1 }
 0x45f   : > { %v1412_v52 = vpack.c.bf16 %v1406_v50, %v1406_v50 }
 0x460   : > { %v3449_v53 = vpop.f32.mrf.mxu1 }
 0x461   : > { %3488 = vmatmul.mubr.bf16.vlgmr.msra.gmra.mxu0 %v1412_v52 }
 0x462   : > { %3498 = vmatpush3.bf16.msra.mxu0 %v3812_v51  ;;  %v1409_v54 = vpop.f32.mrf.mxu1  ;;  %3513 = vmatprep.mubr.msk.bf16.mxu0 %vm3980_vm0, %v3979_v0 }
 0x463   : > { %3499 = vmatprep.subr.bf16.mxu0 %v3979_v0 }
 0x464   : > { %v3450_v56 = vpop.f32.mrf.mxu1 }
 0x466   : > { %3500 = vmatpush3.bf16.msra.mxu0 %v3813_v55 }
 0x467   : > { %3501 = vmatprep.subr.bf16.mxu0 %v3979_v0 }
 0x46a   : > { %3502 = vmatpush3.bf16.msra.mxu0 %v3814_v57 }
 0x46b   : > { %3503 = vmatprep.subr.bf16.mxu0 %v3979_v0 }
 0x46e   : > { %3504 = vmatpush3.bf16.msra.mxu0 %v3815_v58 }
 0x46f   : > { %3505 = vmatprep.subr.bf16.mxu0 %v3979_v0 }
 0x472   : > { %3506 = vmatpush3.bf16.msra.mxu0 %v3817_v59 }
 0x473   : > { %3507 = vmatprep.subr.bf16.mxu0 %v3979_v0 }
 0x476   : > { %3508 = vmatpush3.bf16.msra.mxu0 %v3819_v60 }
 0x477   : > { %3509 = vmatprep.subr.bf16.mxu0 %v3979_v0 }
 0x47a   : > { %3510 = vmatpush3.bf16.msra.mxu0 %v3821_v61 }
 0x47b   : > { %3511 = vmatprep.subr.bf16.mxu0 %v3979_v0 }
 0x47e   : > { %3512 = vmatpush3.bf16.msra.mxu0 %v3823_v62  ;;  %v4289_v63 = vpop.f32.mrf.mxu1 }
 0x47f   : > { %3537 = vmatprep.subr.bf16.mxu0 %v3979_v0 }
 0x480   : > { %v3469_v1 = vpop.f32.mrf.mxu1 }
 0x481   : > { %3514 = vmatmul.mubr.bf16.vlgmr.msra.gmra.mxu0 %v4244_v28  ;;  %v3843_v1 = vld [vmem:[#allocation2 + $0x340] sm:$0xff]  }
 0x482   : > { %v1532_v2 = vpop.f32.mrf.mxu1  ;;  %3553 = vmatprep.mubr.msk.bf16.mxu0 %vm3980_vm0, %v3979_v0  ;;  %3538 = vmatpush3.bf16.msra.mxu0 %v3828_v9  ;;  %v3020_v9 = vld [vmem:[%s4410_s5 + $0x8] sm:$0x1] }
 0x483   : > { %3539 = vmatprep.subr.bf16.mxu0 %v3979_v0  ;;  %v3844_v2 = vld [vmem:[#allocation2 + $0x3f8] sm:$0xff]  }
 0x484   : > { %v3470_v3 = vpop.f32.mrf.mxu1 }
 0x485   : > { %v3845_v3 = vld [vmem:[#allocation2 + $0x3f0] sm:$0xff]  }
 0x486   : > { %v1670_v4 = vpop.f32.mrf.mxu1  ;;  %3540 = vmatpush3.bf16.msra.mxu0 %v3829_v10 }
 0x487   : > { %3541 = vmatprep.subr.bf16.mxu0 %v3979_v0 }
 0x488   : > { %v3495_v5 = vpop.f32.mrf.mxu1 }
 0x489   : > { %v3847_v5 = vld [vmem:[#allocation2 + $0x3e0] sm:$0xff]  }
 0x48a   : > { %v1673_v6 = vpop.f32.mrf.mxu1  ;;  %3542 = vmatpush3.bf16.msra.mxu0 %v3830_v11 }
 0x48b   : > { %v1677_v7 = vpack.c.bf16 %v1673_v6, %v1670_v4  ;;  %3543 = vmatprep.subr.bf16.mxu0 %v3979_v0  ;;  %v3846_v4 = vld [vmem:[#allocation2 + $0x3e8] sm:$0xff]   ;;  %v3848_v6 = vld [vmem:[#allocation2 + $0x3d8] sm:$0xff]  }
 0x48c   : > { %v3496_v8 = vpop.f32.mrf.mxu1 }
 0x48d   : > { %3534 = vmatmul.mubr.bf16.vlgmr.msra.gmra.mxu1 %v1677_v7  ;;  %v3849_v7 = vld [vmem:[#allocation2 + $0x3d0] sm:$0xff]   ;;  %v3850_v8 = vld [vmem:[#allocation2 + $0x3c8] sm:$0xff]  }
 0x48e   : > { %3573 = vmatprep.mubr.msk.bf16.mxu1 %vm3980_vm0, %v3979_v0  ;;  %3544 = vmatpush3.bf16.msra.mxu0 %v3831_v13 }
 0x48f   : > { %3545 = vmatprep.subr.bf16.mxu0 %v3979_v0  ;;  %3558 = vmatpush3.bf16.msra.mxu1 %v3836_v18  ;;  %v3851_v18 = vld [vmem:[#allocation2 + $0x3c0] sm:$0xff]  }
 0x490   : > { %3559 = vmatprep.subr.bf16.mxu1 %v3979_v0 }
 0x492   : > { %3546 = vmatpush3.bf16.msra.mxu0 %v3832_v14 }
 0x493   : > { %3547 = vmatprep.subr.bf16.mxu0 %v3979_v0  ;;  %3560 = vmatpush3.bf16.msra.mxu1 %v3837_v19  ;;  %v3852_v19 = vld [vmem:[#allocation2 + $0x3b8] sm:$0xff]  }
 0x494   : > { %3561 = vmatprep.subr.bf16.mxu1 %v3979_v0 }
 0x496   : > { %3548 = vmatpush3.bf16.msra.mxu0 %v3833_v15 }
 0x497   : > { %3549 = vmatprep.subr.bf16.mxu0 %v3979_v0  ;;  %3562 = vmatpush3.bf16.msra.mxu1 %v3838_v20  ;;  %v3860_v20 = vld [vmem:[#allocation2 + $0x438] sm:$0xff]  }
 0x498   : > { %3563 = vmatprep.subr.bf16.mxu1 %v3979_v0 }
 0x49a   : > { %3550 = vmatpush3.bf16.msra.mxu0 %v3834_v16 }
 0x49b   : > { %3551 = vmatprep.subr.bf16.mxu0 %v3979_v0  ;;  %3564 = vmatpush3.bf16.msra.mxu1 %v3839_v21  ;;  %v3861_v21 = vld [vmem:[#allocation2 + $0x430] sm:$0xff]  }
 0x49c   : > { %3565 = vmatprep.subr.bf16.mxu1 %v3979_v0 }
 0x49e   : > { %3552 = vmatpush3.bf16.msra.mxu0 %v3835_v17 }
 0x49f   : > { %3577 = vmatprep.subr.bf16.mxu0 %v3979_v0  ;;  %3566 = vmatpush3.bf16.msra.mxu1 %v3840_v22  ;;  %v3862_v22 = vld [vmem:[#allocation2 + $0x428] sm:$0xff]  }
 0x4a0   : > { %3567 = vmatprep.subr.bf16.mxu1 %v3979_v0 }
 0x4a3   : > { %3568 = vmatpush3.bf16.msra.mxu1 %v3841_v23  ;;  %v3863_v23 = vld [vmem:[#allocation2 + $0x420] sm:$0xff]  }
 0x4a4   : > { %3569 = vmatprep.subr.bf16.mxu1 %v3979_v0 }
 0x521   : > { %v1617_v24 = vpop.f32.mrf.mxu0 }
 0x522   : > { %v1618_v12 = vadd.f32 %v1617_v24, %v4289_v63  ;;  %v3842_v63 = vld [vmem:[#allocation2 + $0x348] sm:$0xff]   ;;  %v3864_v24 = vld [vmem:[#allocation2 + $0x418] sm:$0xff]  }
 0x523   : > { %v3489_v25 = vpop.f32.mrf.mxu0  ;;  %3570 = vmatpush3.bf16.msra.mxu1 %v3842_v63 }
 0x524   : > { %v1631_v42 = vadd.f32 %v3000_v36, %v1618_v12  ;;  %3571 = vmatprep.subr.bf16.mxu1 %v3979_v0  ;;  %v3865_v25 = vld [vmem:[#allocation2 + $0x410] sm:$0xff]   ;;  %v3854_v12 = vld [vmem:[#allocation2 + $0x3a8] sm:$0xff]   ;;  %v3856_v36 = vld [vmem:[#allocation2 + $0x398] sm:$0xff]  }
 0x525   : > { %v1620_v26 = vpop.f32.mrf.mxu0 }
 0x526   : > { %v4318_v47 = vmax.f32 %v1631_v42, 0.0  ;;  %v3029_v26 = vld [vmem:[%s4410_s5 + $0x9] sm:$0x1]  ;;  %v3867_v42 = vld [vmem:[#allocation2 + $0x400] sm:$0xff]  }
 0x527   : > { %v3490_v27 = vpop.f32.mrf.mxu0  ;;  %3572 = vmatpush3.bf16.msra.mxu1 %v3843_v1 }
 0x528   : > { %v1923_v53 = vsel %vm1914_vm5, %v4318_v47, 0.0  ;;  %3597 = vmatprep.subr.bf16.mxu1 %v3979_v0 }
 0x541   : > { %v1794_v28 = vpop.f32.mrf.mxu0 }
 0x543   : > { %v3515_v29 = vpop.f32.mrf.mxu0 }
 0x545   : > { %v1797_v30 = vpop.f32.mrf.mxu0 }
 0x547   : > { %v3516_v31 = vpop.f32.mrf.mxu0 }
 0x548   : > { %v3853_v31 = vld [vmem:[#allocation2 + $0x3b0] sm:$0xff]  }
 0x54d   : > { %v1883_v34 = vpop.f32.mrf.mxu1 }
 0x54e   : > { %v1884_v35 = vadd.f32 %v1883_v34, %v1794_v28 }
 0x54f   : > { %v3535_v39 = vpop.f32.mrf.mxu1 }
 0x550   : > { %v1898_v43 = vadd.f32 %v3019_v38, %v1884_v35  ;;  %v3855_v35 = vld [vmem:[#allocation2 + $0x3a0] sm:$0xff]  }
 0x551   : > { %v1886_v40 = vpop.f32.mrf.mxu1  ;;  %v3859_v39 = vld [vmem:[#allocation2 + $0x380] sm:$0xff]  }
 0x552   : > { %v1887_v44 = vadd.f32 %v1886_v40, %v1797_v30  ;;  %v1900_v48 = vmax.f32 %v1898_v43, 0.0  ;;  %v2369_v40 = vpack.c.bf16 %v4318_v47, %v4318_v47  ;;  %v3868_v43 = vld [vmem:[#allocation2 + $0x478] sm:$0xff]   ;;  %v3869_v47 = vld [vmem:[#allocation2 + $0x470] sm:$0xff]  }
 0x553   : > { %v3536_v46 = vpop.f32.mrf.mxu1 }
 0x554   : > { %v1899_v32 = vadd.f32 %v3019_v38, %v1887_v44  ;;  %v3858_v38 = vld [vmem:[#allocation2 + $0x388] sm:$0xff]  }
 0x555   : > { %v3038_v44 = vld [vmem:[%s4410_s5 + $0xb] sm:$0x1] }
 0x556   : > { %v1901_v49 = vmax.f32 %v1899_v32, 0.0 }
 0x558   : > { %v1922_v50 = vsel %vm1907_vm4, %v1901_v49, 0.0  ;;  %v4320_v51 = vpack.c.bf16 %v1901_v49, %v1900_v48 }
 0x559   : > { %v1924_v52 = vadd.f32 %v1922_v50, %v1900_v48 }
 0x55b   : > { %v1925_v54 = vadd.f32 %v1924_v52, %v1923_v53  ;;  %v3871_v52 = vld [vmem:[#allocation2 + $0x460] sm:$0xff]   ;;  %v3872_v53 = vld [vmem:[#allocation2 + $0x458] sm:$0xff]  }
 0x55d   : > { %v1926_v55 = vrot.slane %v1925_v54, 4 }
 0x55f   : > { %v1927_v56 = vadd.f32 %v1926_v55, %v1925_v54  ;;  %v3873_v54 = vld [vmem:[#allocation2 + $0x450] sm:$0xff]   ;;  %v3874_v55 = vld [vmem:[#allocation2 + $0x448] sm:$0xff]  }
 0x561   : > { %v1928_v57 = vrot.slane %v1927_v56, 2 }
 0x563   : > { %v1929_v58 = vadd.f32 %v1928_v57, %v1927_v56  ;;  %v3875_v56 = vld [vmem:[#allocation2 + $0x440] sm:$0xff]  }
 0x565   : > { %v1930_v59 = vrot.slane %v1929_v58, 1 }
 0x567   : > { %v1931_v60 = vadd.f32 %v1930_v59, %v1929_v58  ;;  %v3057_v59 = vld [vmem:[%s4410_s5 + $0xa] ss:$0 sm:$0xff] }
 0x569   : > { %v1932_v61 = vmul.f32 0.055555556, %v1931_v60 }
 0x56b   : > { %v1933_v62 = vpack.c.bf16 %v1932_v61, %v1932_v61 }
 0x56d   : > { %3554 = vmatmul.mubr.bf16.vlgmr.msra.gmra.mxu0 %v1933_v62 }
 0x56e   : > { %3593 = vmatprep.mubr.msk.bf16.mxu0 %vm3980_vm0, %v3979_v0  ;;  %3578 = vmatpush3.bf16.msra.mxu0 %v3844_v2 }
 0x56f   : > { %3579 = vmatprep.subr.bf16.mxu0 %v3979_v0 }
 0x572   : > { %3580 = vmatpush3.bf16.msra.mxu0 %v3845_v3 }
 0x573   : > { %3581 = vmatprep.subr.bf16.mxu0 %v3979_v0 }
 0x576   : > { %3582 = vmatpush3.bf16.msra.mxu0 %v3846_v4  ;;  %v3876_v4 = vld [vmem:[#allocation2 + $0x4b8] sm:$0xff]  }
 0x577   : > { %3583 = vmatprep.subr.bf16.mxu0 %v3979_v0 }
 0x57a   : > { %3584 = vmatpush3.bf16.msra.mxu0 %v3847_v5  ;;  %v3877_v5 = vld [vmem:[#allocation2 + $0x4b0] sm:$0xff]  }
 0x57b   : > { %3585 = vmatprep.subr.bf16.mxu0 %v3979_v0 }
 0x57e   : > { %3586 = vmatpush3.bf16.msra.mxu0 %v3848_v6  ;;  %v3878_v6 = vld [vmem:[#allocation2 + $0x4a8] sm:$0xff]  }
 0x57f   : > { %3587 = vmatprep.subr.bf16.mxu0 %v3979_v0 }
 0x582   : > { %3588 = vmatpush3.bf16.msra.mxu0 %v3849_v7  ;;  %v3879_v7 = vld [vmem:[#allocation2 + $0x4a0] sm:$0xff]  }
 0x583   : > { %3589 = vmatprep.subr.bf16.mxu0 %v3979_v0 }
 0x586   : > { %3590 = vmatpush3.bf16.msra.mxu0 %v3850_v8  ;;  %v3880_v8 = vld [vmem:[#allocation2 + $0x498] sm:$0xff]  }
 0x587   : > { %3591 = vmatprep.subr.bf16.mxu0 %v3979_v0 }
 0x58a   : > { %3592 = vmatpush3.bf16.msra.mxu0 %v3851_v18 }
 0x58b   : > { %3617 = vmatprep.subr.bf16.mxu0 %v3852_v19 }
 0x62d   : > { %v2035_v10 = vpop.f32.mrf.mxu0 }
 0x62e   : > { %v2036_v11 = vadd.f32 %v3020_v9, %v2035_v10  ;;  %v3881_v9 = vld [vmem:[#allocation2 + $0x490] sm:$0xff]   ;;  %v3882_v10 = vld [vmem:[#allocation2 + $0x488] sm:$0xff]  }
 0x62f   : > { %v3555_v13 = vpop.f32.mrf.mxu0 }
 0x630   : > { %v2041_v14 = vmax.f32 %v2036_v11, 0.0  ;;  %v3883_v11 = vld [vmem:[#allocation2 + $0x480] sm:$0xff]   ;;  %v3047_v13 = vld [vmem:[%s4410_s5 + $0xc] sm:$0x1] }
 0x631   : > { %v2038_v15 = vpop.f32.mrf.mxu0 }
 0x632   : > { %v2042_v16 = vpack.c.bf16 %v2041_v14, %v2041_v14 }
 0x633   : > { %v3556_v17 = vpop.f32.mrf.mxu0 }
 0x634   : > { %3574 = vmatmul.mubr.bf16.vlgmr.msra.gmra.mxu1 %v2042_v16 }
 0x635   : > { %3613 = vmatprep.mubr.msk.bf16.mxu1 %vm3980_vm0, %v3979_v0  ;;  %3598 = vmatpush3.bf16.msra.mxu1 %v3860_v20  ;;  %v3067_v20 = vld [vmem:[%s4410_s5 + $0xd] ss:$0 sm:$0xff] }
 0x636   : > { %3599 = vmatprep.subr.bf16.mxu1 %v3979_v0 }
 0x639   : > { %3600 = vmatpush3.bf16.msra.mxu1 %v3861_v21 }
 0x63a   : > { %3601 = vmatprep.subr.bf16.mxu1 %v3979_v0 }
 0x63d   : > { %3602 = vmatpush3.bf16.msra.mxu1 %v3862_v22 }
 0x63e   : > { %3603 = vmatprep.subr.bf16.mxu1 %v3979_v0 }
 0x641   : > { %3604 = vmatpush3.bf16.msra.mxu1 %v3863_v23 }
 0x642   : > { %3605 = vmatprep.subr.bf16.mxu1 %v3979_v0 }
 0x645   : > { %3606 = vmatpush3.bf16.msra.mxu1 %v3864_v24 }
 0x646   : > { %3607 = vmatprep.subr.bf16.mxu1 %v3979_v0 }
 0x649   : > { %3608 = vmatpush3.bf16.msra.mxu1 %v3865_v25 }
 0x64a   : > { %3609 = vmatprep.subr.bf16.mxu1 %v3979_v0 }
 0x64d   : > { %3610 = vmatpush3.bf16.msra.mxu1 %v3866_v41 }
 0x64e   : > { %3611 = vmatprep.subr.bf16.mxu1 %v3979_v0  ;;  %v3870_v0 = vld [vmem:[#allocation2 + $0x468] sm:$0xff]  }
 0x651   : > { %3612 = vmatpush3.bf16.msra.mxu1 %v3867_v42 }
 0x652   : > { %3637 = vmatprep.subr.bf16.mxu1 %v3868_v43 }
 0x6f4   : > { %v2144_v27 = vpop.f32.mrf.mxu1 }
 0x6f5   : > { %v2145_v28 = vadd.f32 %v3029_v26, %v2144_v27 }
 0x6f6   : > { %v3575_v29 = vpop.f32.mrf.mxu1 }
 0x6f7   : > { %v2150_v30 = vpack.c.bf16 %v2145_v28, %v2145_v28 }
 0x6f8   : > { %v2147_v33 = vpop.f32.mrf.mxu1 }
 0x6f9   : > { %3594 = vmatmul.mubr.bf16.vlgmr.msra.gmra.mxu0 %v2150_v30 }
 0x6fa   : > { %3618 = vmatpush3.bf16.msra.mxu0 %v3852_v19  ;;  %v3576_v34 = vpop.f32.mrf.mxu1  ;;  %3633 = vmatprep.mubr.bf16.mxu0 %v4320_v51 }
 0x6fb   : > { %3619 = vmatprep.subr.bf16.mxu0 %v3853_v31 }
 0x6fe   : > { %3620 = vmatpush3.bf16.msra.mxu0 %v3853_v31 }
 0x6ff   : > { %3621 = vmatprep.subr.bf16.mxu0 %v3854_v12 }
 0x702   : > { %3622 = vmatpush3.bf16.msra.mxu0 %v3854_v12 }
 0x703   : > { %3623 = vmatprep.subr.bf16.mxu0 %v3855_v35 }
 0x706   : > { %3624 = vmatpush3.bf16.msra.mxu0 %v3855_v35 }
 0x707   : > { %3625 = vmatprep.subr.bf16.mxu0 %v3856_v36 }
 0x70a   : > { %3626 = vmatpush3.bf16.msra.mxu0 %v3856_v36 }
 0x70b   : > { %3627 = vmatprep.subr.bf16.mxu0 %v3857_v37 }
 0x70e   : > { %3628 = vmatpush3.bf16.msra.mxu0 %v3857_v37 }
 0x70f   : > { %3629 = vmatprep.subr.bf16.mxu0 %v3858_v38 }
 0x712   : > { %3630 = vmatpush3.bf16.msra.mxu0 %v3858_v38 }
 0x713   : > { %3631 = vmatprep.subr.bf16.mxu0 %v3859_v39 }
 0x716   : > { %3632 = vmatpush3.bf16.msra.mxu0 %v3859_v39 }
 0x717   : > { %3657 = vmatprep.subr.bf16.mxu0 %v3876_v4 }
 0x719   : > { %3634 = vmatmul.mubr.bf16.vlgmr.msra.gmra.mxu0 %v2369_v40 }
 0x71a   : > { %3658 = vmatpush3.bf16.msra.mxu0 %v3876_v4 }
 0x71b   : > { %3659 = vmatprep.subr.bf16.mxu0 %v3877_v5 }
 0x71e   : > { %3660 = vmatpush3.bf16.msra.mxu0 %v3877_v5 }
 0x71f   : > { %3661 = vmatprep.subr.bf16.mxu0 %v3878_v6 }
 0x722   : > { %3662 = vmatpush3.bf16.msra.mxu0 %v3878_v6 }
 0x723   : > { %3663 = vmatprep.subr.bf16.mxu0 %v3879_v7 }
 0x726   : > { %3664 = vmatpush3.bf16.msra.mxu0 %v3879_v7 }
 0x727   : > { %3665 = vmatprep.subr.bf16.mxu0 %v3880_v8 }
 0x72a   : > { %3666 = vmatpush3.bf16.msra.mxu0 %v3880_v8 }
 0x72b   : > { %3667 = vmatprep.subr.bf16.mxu0 %v3881_v9 }
 0x72e   : > { %3668 = vmatpush3.bf16.msra.mxu0 %v3881_v9 }
 0x72f   : > { %3669 = vmatprep.subr.bf16.mxu0 %v3882_v10 }
 0x732   : > { %3670 = vmatpush3.bf16.msra.mxu0 %v3882_v10 }
 0x733   : > { %3671 = vmatprep.subr.bf16.mxu0 %v3883_v11 }
 0x736   : > { %3672 = vmatpush3.bf16.msra.mxu0 %v3883_v11 }
 0x7b9   : > { %v2252_v45 = vpop.f32.mrf.mxu0 }
 0x7ba   : > { %v2253_v46 = vadd.f32 %v3038_v44, %v2252_v45 }
 0x7bb   : > { %v3595_v32 = vpop.f32.mrf.mxu0 }
 0x7bc   : > { %v2258_v48 = vmax.f32 %v2253_v46, 0.0 }
 0x7bd   : > { %v2255_v49 = vpop.f32.mrf.mxu0 }
 0x7be   : > { %v2259_v50 = vpack.c.bf16 %v2258_v48, %v2258_v48 }
 0x7bf   : > { %v3596_v51 = vpop.f32.mrf.mxu0 }
 0x7c0   : > { %3614 = vmatmul.mubr.bf16.vlgmr.msra.gmra.mxu1 %v2259_v50 }
 0x7c1   : > { %3638 = vmatpush3.bf16.msra.mxu1 %v3868_v43 }
 0x7c2   : > { %3639 = vmatprep.subr.bf16.mxu1 %v3869_v47 }
 0x7c5   : > { %3640 = vmatpush3.bf16.msra.mxu1 %v3869_v47 }
 0x7c6   : > { %3641 = vmatprep.subr.bf16.mxu1 %v3870_v0 }
 0x7c9   : > { %3642 = vmatpush3.bf16.msra.mxu1 %v3870_v0 }
 0x7ca   : > { %3643 = vmatprep.subr.bf16.mxu1 %v3871_v52 }
 0x7cd   : > { %3644 = vmatpush3.bf16.msra.mxu1 %v3871_v52 }
 0x7ce   : > { %3645 = vmatprep.subr.bf16.mxu1 %v3872_v53 }
 0x7d1   : > { %3646 = vmatpush3.bf16.msra.mxu1 %v3872_v53 }
 0x7d2   : > { %3647 = vmatprep.subr.bf16.mxu1 %v3873_v54 }
 0x7d5   : > { %3648 = vmatpush3.bf16.msra.mxu1 %v3873_v54 }
 0x7d6   : > { %3649 = vmatprep.subr.bf16.mxu1 %v3874_v55 }
 0x7d9   : > { %v3635_v57 = vpop.f32.mrf.mxu0  ;;  %3650 = vmatpush3.bf16.msra.mxu1 %v3874_v55 }
 0x7da   : > { %3651 = vmatprep.subr.bf16.mxu1 %v3875_v56  ;;  %v2486_v61 = vadd.f32 %v3635_v57, %v3057_v59 }
 0x7db   : > { %v2477_v58 = vpop.f32.mrf.mxu0 }
 0x7dc   : > { %v2478_v63 = vadd.f32 %v3057_v59, %v2477_v58  ;;  %v2492_v3 = vpack.c.bf16 %v2486_v61, %v2486_v61 }
 0x7dd   : > { %v3636_v60 = vpop.f32.mrf.mxu0  ;;  %3652 = vmatpush3.bf16.msra.mxu1 %v3875_v56 }
 0x7df   : > { %v2480_v62 = vpop.f32.mrf.mxu0 }
 0x7e0   : > { %v2481_v1 = vadd.f32 %v3057_v59, %v2480_v62 }
 0x7e2   : > { %v2491_v2 = vpack.c.bf16 %v2481_v1, %v2478_v63 }
 0x7e4   : > { %3653 = vmatprep.mubr.bf16.mxu1 %v2491_v2 }
 0x7e5   : > { %3654 = vmatmul.mubr.bf16.vlgmr.msra.gmra.mxu1 %v2492_v3 }
 0x880   : > { %v2361_v14 = vpop.f32.mrf.mxu1 }
 0x881   : > { %v2362_v15 = vadd.f32 %v3047_v13, %v2361_v14 }
 0x882   : > { %v3615_v16 = vpop.f32.mrf.mxu1 }
 0x883   : > { %2367 = vst [vmem:[%s327_s8] sm:$0x1] %v2362_v15 }
 0x884   : > { %v2364_v17 = vpop.f32.mrf.mxu1 }
 0x886   : > { %v3616_v18 = vpop.f32.mrf.mxu1 }
 0x8a5   : > { %v3655_v19 = vpop.f32.mrf.mxu1 }
 0x8a6   : > { %v2609_v22 = vadd.f32 %v3655_v19, %v3067_v20 }
 0x8a7   : > { %v2600_v21 = vpop.f32.mrf.mxu1 }
 0x8a8   : > { %v2601_v24 = vadd.f32 %v3067_v20, %v2600_v21  ;;  %v2616_v27 = vmax.f32 %v2609_v22, 0.0 }
 0x8a9   : > { %v3656_v23 = vpop.f32.mrf.mxu1 }
 0x8aa   : > { %v2614_v28 = vmax.f32 %v2601_v24, 0.0  ;;  %v2618_v31 = vpack.c.bf16 %v2616_v27, %v2616_v27 }
 0x8ab   : > { %v2603_v25 = vpop.f32.mrf.mxu1 }
 0x8ac   : > { %v2604_v26 = vadd.f32 %v3067_v20, %v2603_v25 }
 0x8ae   : > { %v2615_v29 = vmax.f32 %v2604_v26, 0.0 }
 0x8b0   : > { %v2617_v30 = vpack.c.bf16 %v2615_v29, %v2614_v28 }
 0x8b2   : > { %3673 = vmatprep.mubr.bf16.mxu0 %v2617_v30 }
 0x8b3   : > { %3674 = vmatmul.mubr.bf16.vlgmr.msra.gmra.mxu0 %v2618_v31 }
 0x8b4   : > { %3923 = shalt.err (!%p3920_p0)
}
 0x8b5   : > { %s3924_s28 = scalar_lea.hbm %s2759_s22, 16  ;;  %s3928_s9 = scalar_lea.hbm %s4411_s6, 64 }
 0x8b6   : > { %p3925_p1 = scmp.ne.s32.totalorder %s2759_s22, %s3924_s28  ;;  %p3929_p4 = scmp.lt.s32.totalorder %s2759_s22, %s4411_s6 }
 0x8b7   : > { %p3930_p7 = scmp.lt.s32.totalorder %s3928_s9, %s3924_s28 }
 0x8b8   : > { %p3926_p2 = pnand %p3925_p1, %p4060_p5 }
 0x8b9   : > { %p3931_p6 = por %p3930_p7, %p3929_p4 }
 0x8ba   : > { %p3927_p3 = pneg %p3926_p2 }
 0x8bc   : > { %p3932_p8 = pnand %p3931_p6, %p3927_p3 }
 0x8be   : > { %3935 = shalt.err (!%p3932_p8)
}
 0x8bf   : > { %3682 = dma.vmem_to_hbm [thread:$0]  (%p4060_p5), %s2762_s15, 16, %s2759_s22, %s2744_s18   ;;  %v3077_v33 = vld [vmem:[%s4410_s5 + $0xe] ss:$0 sm:$0xff] }
 0x8c0   : > { %s3677_s17 = smul.u32 24, %s4099_s21 }
 0x8c2   : > { %s357_s20 = scalar_lea.vmem %s4412_s7, %s3677_s17 }
 0x973   : > { %v3675_v34 = vpop.f32.mrf.mxu0 }
 0x974   : > { %v2735_v12 = vadd.f32 %v3675_v34, %v3077_v33 }
 0x975   : > { %v2726_v35 = vpop.f32.mrf.mxu0 }
 0x976   : > { %2742 = vst [vmem:[%s357_s20 + $0x10] sm:$0xff] %v2735_v12  ;;  %v2727_v36 = vadd.f32 %v3077_v33, %v2726_v35 }
 0x977   : > { %v3676_v37 = vpop.f32.mrf.mxu0 }
 0x978   : > { %2740 = vst [vmem:[%s357_s20] sm:$0xff] %v2727_v36 }
 0x979   : > { %v2729_v38 = vpop.f32.mrf.mxu0 }
 0x97a   : > { %v2730_v39 = vadd.f32 %v3077_v33, %v2729_v38 }
 0x97c   : > { %2741 = vst [vmem:[%s357_s20 + $0x8] sm:$0xff] %v2730_v39 }
 0x97d PF: > { %p3694_p5 = scmp.ge.s32.totalorder %s3974_s27, 2  ;;  %s2776_s11 = sand.u32 1, %s3962_s24  }
 0x97e   : > { %p4416_p9 = scmp.ne.s32.totalorder %s4414_s12, 0  ;;  %s2777_s21 = scalar_lea.sflag [#allocation4], %s2776_s11 }
 0x980   : > { %p3689_p10 = pnand %p3694_p5, %p4416_p9 }
 0x982   : > { %p3690_p11 = pneg %p3689_p10 }
 0x984   : > { %3957 = dma.done.wait (%p3690_p11), %s2777_s21, 16  }
 0x985   : > { %3959 = vsyncadd (%p3690_p11), %s2777_s21, 4294967280  ;;  %p19_p12 = scmp.ge.s32.totalorder %s4047_s30, 6   ;;  %s4417_s24 = smov %s3966_s25 }
 0x986   : > { %s4418_s25 = smov %s3970_s26  ;;  %s4419_s26 = smov %s4058_s10 }
 0x987   : > { %s4420_s27 = smov %s4047_s30  ;;  %21 = sbr.rel (!%p19_p12) target bundleno = 4 (0x4), region = 137 }
 0x98c   :  { %2789 = vsyncpa [#allocation3], 1 }
 0x98d   :  { %2791 = vsyncpa [#allocation3 + $0x1], 1 }
 0x98e   :  { %2792 = vsyncpa [#allocation4], 1 }
 0x98f   :  { %2794 = vsyncpa [#allocation4 + $0x1], 1 }

</bundles_post_ra>
